<compile_context>
chip_gen: v7x
topology: tpu7x:2x2x1
jax: 0.10.0
libtpu: 0.0.40
codegen_flags: <defaults>
</compile_context>

<pallas_src>
import jax
import jax.numpy as jnp
from jax.experimental import pallas as pl
from jax.experimental.pallas import tpu as pltpu

EPS = 1e-5


def _round_up(a, b):
    return (a + b - 1) // b * b


# ---------------------------------------------------------------------------
# Static geometry for the flattened padded-frame conv layout.
#   padded frame : [Hp, Wp] = [H+2, W+2], flattened + zero-extended to S_in
#   q-frame      : conv output indexed by q = y*Wp + x  (row stride = Wp),
#                  length Pq = H*Wp (columns x >= W are discarded "garbage"),
#                  padded to Pq_pad (multiple of the lane tile TP).
# ---------------------------------------------------------------------------
def _geom(H, W, max_tile=2048):
    Hp, Wp = H + 2, W + 2
    Pq = H * Wp
    TP = min(_round_up(Pq, 128), max_tile)          # spatial (lane) tile
    Pq_pad = _round_up(Pq, TP)
    margin = _round_up(2 * Wp + 2, 128)             # covers the largest tap offset
    return dict(H=H, W=W, Hp=Hp, Wp=Wp, Pq=Pq, TP=TP, Pq_pad=Pq_pad,
                num_tiles=Pq_pad // TP, LW=TP + margin, S_in=Pq_pad + margin)


def _nchw_to_frame(x, g):
    """[N, C, H, W] -> zero-padded flattened frame [N, C, S_in] (f32)."""
    n, c = x.shape[:2]
    xp = jnp.pad(x, ((0, 0), (0, 0), (1, 1), (1, 1)))
    xp = xp.reshape(n, c, g["Hp"] * g["Wp"])
    return jnp.pad(xp, ((0, 0), (0, 0), (0, g["S_in"] - g["Hp"] * g["Wp"])))


def _qframe_to_nchw(y, g):
    """q-frame [N, C, Pq_pad] -> [N, C, H, W] (drops garbage columns)."""
    n, c = y.shape[:2]
    return y[:, :, :g["Pq"]].reshape(n, c, g["H"], g["Wp"])[:, :, :, :g["W"]]


def _interior_mask(g):
    """[1, S_in] mask: 1 on interior pixels of the padded frame, 0 on borders."""
    m = jnp.zeros((g["Hp"], g["Wp"]), jnp.float32)
    m = m.at[1:g["H"] + 1, 1:g["W"] + 1].set(1.0)
    m = m.reshape(1, g["Hp"] * g["Wp"])
    return jnp.pad(m, ((0, 0), (0, g["S_in"] - g["Hp"] * g["Wp"])))


def _qvalid_mask(g):
    """[1, Pq_pad] mask: 1 on valid q-frame output positions (x < W, q < Pq)."""
    m = jnp.zeros((g["H"], g["Wp"]), jnp.float32).at[:, :g["W"]].set(1.0)
    m = m.reshape(1, g["Pq"])
    return jnp.pad(m, ((0, 0), (0, g["Pq_pad"] - g["Pq"])))


# ---------------------------------------------------------------------------
# Kernel 1: ConvTranspose2d(kernel=2, stride=2) as a per-pixel matmul in the
# channels-on-sublanes layout.  Output is [N, 4*Cout, H*W] (lane axis = H*W).
# ---------------------------------------------------------------------------
def _convt_kernel(x_ref, w_ref, b_ref, o_ref):
    # x_ref: (1, Cin, HW), w_ref: (4*Cout, Cin), b_ref: (4*Cout, 1)
    o_ref[0] = (jnp.dot(w_ref[...], x_ref[0], preferred_element_type=jnp.float32)
                + b_ref[...])


def conv_transpose_up(x_nchw, w_ct, b_ct):
    n, cin, h, w = x_nchw.shape
    cout = w_ct.shape[1]
    hw = h * w
    x = x_nchw.reshape(n, cin, hw)
    # wmat[(ky*2+kx)*Cout + co, ci] = W_ct[ci, co, ky, kx]
    wmat = jnp.transpose(w_ct, (2, 3, 1, 0)).reshape(4 * cout, cin)
    bmat = jnp.tile(b_ct, 4).reshape(4 * cout, 1)

    u = pl.pallas_call(
        _convt_kernel,
        out_shape=jax.ShapeDtypeStruct((n, 4 * cout, hw), jnp.float32),
        grid=(n,),
        in_specs=[pl.BlockSpec((1, cin, hw), lambda i: (i, 0, 0)),
                  pl.BlockSpec((4 * cout, cin), lambda i: (0, 0)),
                  pl.BlockSpec((4 * cout, 1), lambda i: (0, 0))],
        out_specs=pl.BlockSpec((1, 4 * cout, hw), lambda i: (i, 0, 0)),
        compiler_params=pltpu.CompilerParams(dimension_semantics=("parallel",)),
    )(x, wmat, bmat)

    # TODO(synk): scatter the 2x2 sub-pixels with strided stores inside the
    # kernel instead of this (small) XLA transpose pass.
    u = u.reshape(n, 2, 2, cout, h, w)
    return jnp.transpose(u, (0, 3, 4, 1, 5, 2)).reshape(n, cout, 2 * h, 2 * w)


# ---------------------------------------------------------------------------
# Kernel 2: 3x3 conv (padding=1, no bias) over one or more channel-split
# inputs, with fused per-channel BN statistics and (optionally) a fused
# BN-affine + ReLU applied to the inputs (the previous layer's BN1+ReLU).
# ---------------------------------------------------------------------------
def _make_conv_kernel(n_inputs, offsets, TP, LW, apply_act):
    def kernel(*args):
        pos = 0
        x_refs = args[pos:pos + n_inputs]; pos += n_inputs
        w_refs = args[pos:pos + n_inputs]; pos += n_inputs
        if apply_act:
            ss_refs = args[pos:pos + 2 * n_inputs]; pos += 2 * n_inputs
            imask_ref = args[pos]; pos += 1
        qmask_ref = args[pos]; pos += 1
        y_ref, stats_ref = args[pos], args[pos + 1]

        base = pl.multiple_of(pl.program_id(1) * TP, 128)
        cout = y_ref.shape[1]
        acc = jnp.zeros((cout, TP), jnp.float32)

        for i in range(n_inputs):
            # One lane-aligned window load per input; the 9 tap views are
            # static in-VMEM slices of it (no 9x im2col in HBM).
            win = x_refs[i][0, :, pl.ds(base, LW)]                 # (Cin_i, LW)
            if apply_act:
                scale = ss_refs[2 * i][...]                        # (Cin_i, 1)
                shift = ss_refs[2 * i + 1][...]
                m = imask_ref[:, pl.ds(base, LW)]                  # (1, LW)
                # fused previous-layer BN affine + ReLU; the interior mask
                # re-zeroes the conv padding after the affine.
                win = jnp.maximum(win * scale + shift, 0.0) * m
            for k, off in enumerate(offsets):
                # TODO(synk): stack the 9 taps along sublanes for a single
                # K=9*Cin matmul once channel counts make MXU fill matter.
                acc = acc + jnp.dot(w_refs[i][k], win[:, off:off + TP],
                                    preferred_element_type=jnp.float32)

        y_ref[0] = acc

        # Per-(batch, tile) partial BN statistics over *valid* output pixels
        # only (write-once -> both grid axes stay 'parallel').
        qm = qmask_ref[...]                                        # (1, TP)
        masked = acc * qm
        s = jnp.sum(masked, axis=1, keepdims=True)                 # (Cout, 1)
        sq = jnp.sum(masked * acc, axis=1, keepdims=True)          # (Cout, 1)
        stats_ref[0, 0, :, 0:1] = s
        stats_ref[0, 0, :, 1:2] = sq

    return kernel


def conv3x3_with_stats(g, xs, ws, cout, scale_shift=None):
    """3x3 conv (padding=1, bias=False) summed over the channel-split inputs.

    xs: list of [N, Cin_i, S_in] zero-padded flattened frames (CHW layout).
    ws: list of PyTorch-layout weights [Cout, Cin_i, 3, 3].
    scale_shift: optional list of (scale [Cin_i], shift [Cin_i]); when given,
      each input goes through relu(x*scale + shift) (masked back to zero on
      the conv padding) inside the kernel -> fuses the previous BN+ReLU.
    Returns (y_qframe [N, Cout, Pq_pad], sum [Cout], sumsq [Cout]).
    """
    n = xs[0].shape[0]
    n_in = len(xs)
    apply_act = scale_shift is not None
    TP, LW, S_in = g["TP"], g["LW"], g["S_in"]
    num_tiles, Pq_pad, Wp = g["num_tiles"], g["Pq_pad"], g["Wp"]
    offsets = tuple(dy * Wp + dx for dy in range(3) for dx in range(3))

    # w9[k, co, ci] = W[co, ci, dy, dx] with k = dy*3 + dx
    w9 = [jnp.transpose(w, (2, 3, 0, 1)).reshape(9, cout, w.shape[1]) for w in ws]

    args, in_specs = [], []
    for x in xs:
        args.append(x)
        in_specs.append(pl.BlockSpec((1, x.shape[1], S_in), lambda nn, jj: (nn, 0, 0)))
    for w in w9:
        args.append(w)
        in_specs.append(pl.BlockSpec((9, cout, w.shape[2]), lambda nn, jj: (0, 0, 0)))
    if apply_act:
        for sc, sh in scale_shift:
            c = sc.shape[0]
            args += [sc.reshape(c, 1), sh.reshape(c, 1)]
            in_specs += [pl.BlockSpec((c, 1), lambda nn, jj: (0, 0))] * 2
        args.append(_interior_mask(g))
        in_specs.append(pl.BlockSpec((1, S_in), lambda nn, jj: (0, 0)))
    args.append(_qvalid_mask(g))
    in_specs.append(pl.BlockSpec((1, TP), lambda nn, jj: (0, jj)))

    kernel = _make_conv_kernel(n_in, offsets, TP, LW, apply_act)

    y, stats = pl.pallas_call(
        kernel,
        out_shape=(jax.ShapeDtypeStruct((n, cout, Pq_pad), jnp.float32),
                   jax.ShapeDtypeStruct((n, num_tiles, cout, 2), jnp.float32)),
        grid=(n, num_tiles),
        in_specs=in_specs,
        out_specs=(pl.BlockSpec((1, cout, TP), lambda nn, jj: (nn, 0, jj)),
                   pl.BlockSpec((1, 1, cout, 2), lambda nn, jj: (nn, jj, 0, 0))),
        compiler_params=pltpu.CompilerParams(
            dimension_semantics=("parallel", "parallel")),
    )(*args)

    totals = jnp.sum(stats, axis=(0, 1))   # [Cout, 2] tiny XLA reduction
    return y, totals[:, 0], totals[:, 1]


# ---------------------------------------------------------------------------
# Kernel 3: final fused BN affine + ReLU (lane-dense q-frame layout).
# ---------------------------------------------------------------------------
def _bn_relu_kernel(x_ref, scale_ref, shift_ref, o_ref):
    # x_ref: (1, C, TP), scale/shift: (C, 1)
    o_ref[0] = jnp.maximum(x_ref[0] * scale_ref[...] + shift_ref[...], 0.0)


def bn_relu(y, scale, shift, g):
    n, c, ppad = y.shape
    TP = g["TP"]
    return pl.pallas_call(
        _bn_relu_kernel,
        out_shape=jax.ShapeDtypeStruct((n, c, ppad), jnp.float32),
        grid=(n, ppad // TP),
        in_specs=[pl.BlockSpec((1, c, TP), lambda i, j: (i, 0, j)),
                  pl.BlockSpec((c, 1), lambda i, j: (0, 0)),
                  pl.BlockSpec((c, 1), lambda i, j: (0, 0))],
        out_specs=pl.BlockSpec((1, c, TP), lambda i, j: (i, 0, j)),
        compiler_params=pltpu.CompilerParams(
            dimension_semantics=("parallel", "parallel")),
    )(y, scale.reshape(c, 1), shift.reshape(c, 1))


def _bn_affine(s, sq, count, gamma, beta):
    # training-mode BatchNorm: batch mean / biased variance
    mean = s / count
    var = sq / count - mean * mean
    inv_std = 1.0 / jnp.sqrt(var + EPS)
    scale = gamma * inv_std
    shift = beta - mean * scale
    return scale, shift


# ---------------------------------------------------------------------------
# DecoderBlock forward
# ---------------------------------------------------------------------------
@jax.jit
def decoder_block(inputs_nchw, skip_nchw, p):
    n, _, h0, w0 = inputs_nchw.shape
    cout = p["w_up"].shape[1]
    H, W = 2 * h0, 2 * w0
    g = _geom(H, W)

    up = conv_transpose_up(inputs_nchw, p["w_up"], p["b_up"])      # [N,Cout,H,W]
    up_f = _nchw_to_frame(up, g)
    skip_f = _nchw_to_frame(skip_nchw, g)

    count = float(n * H * W)

    # conv1 over (up, skip) without materializing the concat; BN stats fused.
    y1, s1, q1 = conv3x3_with_stats(
        g, [up_f, skip_f], [p["w1"][:, :cout], p["w1"][:, cout:]], cout)
    scale1, shift1 = _bn_affine(s1, q1, count, p["g1"], p["b1"])

    # conv2 reads the re-padded *raw* y1 and applies BN1+ReLU in-kernel.
    y1_f = _nchw_to_frame(_qframe_to_nchw(y1, g), g)
    y2, s2, q2 = conv3x3_with_stats(
        g, [y1_f], [p["w2"]], cout, scale_shift=[(scale1, shift1)])
    scale2, shift2 = _bn_affine(s2, q2, count, p["g2"], p["b2"])

    a2 = bn_relu(y2, scale2, shift2, g)
    return _qframe_to_nchw(a2, g)                                  # NCHW


# ---------------------------------------------------------------------------
# Pure-JAX reference (independent formulation via lax.conv)
# ---------------------------------------------------------------------------
def reference(inputs_nchw, skip_nchw, p):
    prec = jax.lax.Precision.HIGHEST
    x = jnp.transpose(inputs_nchw, (0, 2, 3, 1))
    # ConvTranspose2d(k=2, s=2, p=0) == dilated conv with spatially-flipped kernel
    w_flip = jnp.transpose(p["w_up"][:, :, ::-1, ::-1], (2, 3, 0, 1))  # HWIO
    up = jax.lax.conv_general_dilated(
        x, w_flip, window_strides=(1, 1), padding=((1, 1), (1, 1)),
        lhs_dilation=(2, 2), dimension_numbers=("NHWC", "HWIO", "NHWC"),
        precision=prec,
    ) + p["b_up"]
    skip = jnp.transpose(skip_nchw, (0, 2, 3, 1))
    xcat = jnp.concatenate([up, skip], axis=-1)

    def cbr(inp, w, g, b):
        y = jax.lax.conv_general_dilated(
            inp, jnp.transpose(w, (2, 3, 1, 0)), (1, 1), ((1, 1), (1, 1)),
            dimension_numbers=("NHWC", "HWIO", "NHWC"), precision=prec,
        )
        mean = jnp.mean(y, axis=(0, 1, 2))
        var = jnp.mean(y * y, axis=(0, 1, 2)) - mean * mean
        yn = (y - mean) / jnp.sqrt(var + EPS)
        return jnp.maximum(yn * g + b, 0.0)

    a1 = cbr(xcat, p["w1"], p["g1"], p["b1"])
    a2 = cbr(a1, p["w2"], p["g2"], p["b2"])
    return jnp.transpose(a2, (0, 3, 1, 2))


# ---------------------------------------------------------------------------
if __name__ == "__main__":
    N, IN_FEATS, OUT_FEATS = 2, 8, 4
    H_IN, W_IN = 8, 8                       # inputs spatial; skip is 2x that

    key = jax.random.PRNGKey(0)
    ks = jax.random.split(key, 11)

    params = {
        # ConvTranspose2d(in, out, 2, 2): weight [Cin, Cout, 2, 2], bias [Cout]
        "w_up": 0.2 * jax.random.normal(ks[0], (IN_FEATS, OUT_FEATS, 2, 2), jnp.float32),
        "b_up": 0.1 * jax.random.normal(ks[1], (OUT_FEATS,), jnp.float32),
        # Conv2d(2*out, out, 3, pad=1, bias=False): weight [Cout, 2*Cout, 3, 3]
        "w1": 0.2 * jax.random.normal(ks[2], (OUT_FEATS, 2 * OUT_FEATS, 3, 3), jnp.float32),
        "g1": 1.0 + 0.1 * jax.random.normal(ks[3], (OUT_FEATS,), jnp.float32),
        "b1": 0.1 * jax.random.normal(ks[4], (OUT_FEATS,), jnp.float32),
        # Conv2d(out, out, 3, pad=1, bias=False): weight [Cout, Cout, 3, 3]
        "w2": 0.2 * jax.random.normal(ks[5], (OUT_FEATS, OUT_FEATS, 3, 3), jnp.float32),
        "g2": 1.0 + 0.1 * jax.random.normal(ks[6], (OUT_FEATS,), jnp.float32),
        "b2": 0.1 * jax.random.normal(ks[7], (OUT_FEATS,), jnp.float32),
    }

    inputs = jax.random.normal(ks[8], (N, IN_FEATS, H_IN, W_IN), jnp.float32)   # NCHW
    skip = jax.random.normal(ks[9], (N, OUT_FEATS, 2 * H_IN, 2 * W_IN), jnp.float32)

    out = decoder_block(inputs, skip, params)
    out = jax.block_until_ready(out)

    ref = jax.block_until_ready(reference(inputs, skip, params))
    assert out.shape == (N, OUT_FEATS, 2 * H_IN, 2 * W_IN), out.shape
    assert bool(jnp.all(jnp.isfinite(out)))
    max_err = float(jnp.max(jnp.abs(out - ref)))
    assert max_err < 2e-3, f"mismatch vs reference: {max_err}"

    print("KERNEL_OK")
</pallas_src>

<mosaic_0001>
module attributes {stable_mosaic.version = 11 : i64} {
  func.func @_convt_kernel(%arg0: i32, %arg1: memref<1x8x64xf32, #tpu.memory_space<vmem>>, %arg2: memref<16x8xf32, #tpu.memory_space<vmem>>, %arg3: memref<16x1xf32, #tpu.memory_space<vmem>>, %arg4: memref<1x16x64xf32, #tpu.memory_space<vmem>>) attributes {dimension_semantics = [#tpu.dimension_semantics<parallel>], iteration_bounds = array<i64: 2>, scalar_prefetch = 0 : i64, scratch_operands = 0 : i64, tpu.core_type = #tpu.core_type<tc>, window_params = [{transform_indices = @transform_0, window_bounds = array<i64: 1, 8, 64>}, {pipeline_mode = #tpu.pipeline_mode<synchronous>, transform_indices = @transform_1, window_bounds = array<i64: 16, 8>}, {pipeline_mode = #tpu.pipeline_mode<synchronous>, transform_indices = @transform_2, window_bounds = array<i64: 16, 1>}, {transform_indices = @transform_3, window_bounds = array<i64: 1, 16, 64>}]} {
    %c0 = arith.constant 0 : index
    %c0_0 = arith.constant 0 : index
    %0 = vector.load %arg2[%c0, %c0_0] : memref<16x8xf32, #tpu.memory_space<vmem>>, vector<16x8xf32>
    %c0_1 = arith.constant 0 : index
    %c0_2 = arith.constant 0 : index
    %c0_3 = arith.constant 0 : index
    %1 = vector.load %arg1[%c0_1, %c0_2, %c0_3] : memref<1x8x64xf32, #tpu.memory_space<vmem>>, vector<1x8x64xf32>
    %2 = vector.shape_cast %1 : vector<1x8x64xf32> to vector<8x64xf32>
    %cst = arith.constant dense<0.000000e+00> : vector<16x64xf32>
    %3 = tpu.matmul %0, %2, %cst {dimension_numbers = #tpu.dot_dimension_numbers<[1], [0], [0], [1], [0, 0, 1, 1], [], []>} : vector<16x8xf32>, vector<8x64xf32>, vector<16x64xf32> -> vector<16x64xf32>
    %c0_4 = arith.constant 0 : index
    %c0_5 = arith.constant 0 : index
    %4 = vector.load %arg3[%c0_4, %c0_5] : memref<16x1xf32, #tpu.memory_space<vmem>>, vector<16x1xf32>
    %5 = vector.broadcast %4 : vector<16x1xf32> to vector<16x64xf32>
    %6 = arith.addf %3, %5 : vector<16x64xf32>
    %c0_6 = arith.constant 0 : index
    %c0_7 = arith.constant 0 : index
    %c0_8 = arith.constant 0 : index
    %7 = vector.load %arg4[%c0_6, %c0_7, %c0_8] : memref<1x16x64xf32, #tpu.memory_space<vmem>>, vector<1x16x64xf32>
    %8 = vector.shape_cast %7 : vector<1x16x64xf32> to vector<16x64xf32>
    %9 = vector.shape_cast %6 : vector<16x64xf32> to vector<1x16x64xf32>
    tpu.vector_store %arg4[%c0_6, %c0_7, %c0_8], %9 {strides = array<i32>} : memref<1x16x64xf32, #tpu.memory_space<vmem>>, vector<1x16x64xf32>,
    return
  }
  func.func @transform_0(%arg0: i32) -> (i32, i32, i32) {
    %c0_i32 = arith.constant 0 : i32
    %c0_i32_0 = arith.constant 0 : i32
    %c0_i32_1 = arith.constant 0 : i32
    return %arg0, %c0_i32, %c0_i32_0 : i32, i32, i32
  }
  func.func @transform_1(%arg0: i32) -> (i32, i32) {
    %c0_i32 = arith.constant 0 : i32
    %c0_i32_0 = arith.constant 0 : i32
    %c0_i32_1 = arith.constant 0 : i32
    return %c0_i32, %c0_i32_0 : i32, i32
  }
  func.func @transform_2(%arg0: i32) -> (i32, i32) {
    %c0_i32 = arith.constant 0 : i32
    %c0_i32_0 = arith.constant 0 : i32
    %c0_i32_1 = arith.constant 0 : i32
    return %c0_i32, %c0_i32_0 : i32, i32
  }
  func.func @transform_3(%arg0: i32) -> (i32, i32, i32) {
    %c0_i32 = arith.constant 0 : i32
    %c0_i32_0 = arith.constant 0 : i32
    %c0_i32_1 = arith.constant 0 : i32
    return %arg0, %c0_i32, %c0_i32_0 : i32, i32, i32
  }
}

module attributes {stable_mosaic.version = 11 : i64} {
  func.func @kernel(%arg0: i32, %arg1: i32, %arg2: memref<1x4x512xf32, #tpu.memory_space<vmem>>, %arg3: memref<1x4x512xf32, #tpu.memory_space<vmem>>, %arg4: memref<9x4x4xf32, #tpu.memory_space<vmem>>, %arg5: memref<9x4x4xf32, #tpu.memory_space<vmem>>, %arg6: memref<1x384xf32, #tpu.memory_space<vmem>>, %arg7: memref<1x4x384xf32, #tpu.memory_space<vmem>>, %arg8: memref<1x1x4x2xf32, #tpu.memory_space<vmem>>) attributes {dimension_semantics = [#tpu.dimension_semantics<parallel>, #tpu.dimension_semantics<parallel>], iteration_bounds = array<i64: 2, 1>, scalar_prefetch = 0 : i64, scratch_operands = 0 : i64, tpu.core_type = #tpu.core_type<tc>, window_params = [{transform_indices = @transform_0, window_bounds = array<i64: 1, 4, 512>}, {transform_indices = @transform_1, window_bounds = array<i64: 1, 4, 512>}, {pipeline_mode = #tpu.pipeline_mode<synchronous>, transform_indices = @transform_2, window_bounds = array<i64: 9, 4, 4>}, {pipeline_mode = #tpu.pipeline_mode<synchronous>, transform_indices = @transform_3, window_bounds = array<i64: 9, 4, 4>}, {transform_indices = @transform_4, window_bounds = array<i64: 1, 384>}, {transform_indices = @transform_5, window_bounds = array<i64: 1, 4, 384>}, {transform_indices = @transform_6, window_bounds = array<i64: 1, 1, 4, 2>}]} {
    %c384_i32 = arith.constant 384 : i32
    %0 = arith.muli %arg1, %c384_i32 : i32
    %1 = tpu.assume_multiple %0, 128 : i32
    %cst = arith.constant 0.000000e+00 : f32
    %2 = vector.broadcast %cst : f32 to vector<4x384xf32>
    %c0 = arith.constant 0 : index
    %c0_0 = arith.constant 0 : index
    %3 = arith.index_cast %1 : i32 to index
    %4 = vector.load %arg2[%c0, %c0_0, %3] : memref<1x4x512xf32, #tpu.memory_space<vmem>>, vector<1x4x512xf32>
    %5 = vector.shape_cast %4 : vector<1x4x512xf32> to vector<4x512xf32>
    %c0_1 = arith.constant 0 : index
    %c0_2 = arith.constant 0 : index
    %c0_3 = arith.constant 0 : index
    %6 = vector.load %arg4[%c0_1, %c0_2, %c0_3] : memref<9x4x4xf32, #tpu.memory_space<vmem>>, vector<1x4x4xf32>
    %7 = vector.shape_cast %6 : vector<1x4x4xf32> to vector<4x4xf32>
    %8 = vector.extract_strided_slice %5 {offsets = [0, 0], sizes = [4, 384], strides = [1, 1]} : vector<4x512xf32> to vector<4x384xf32>
    %cst_4 = arith.constant dense<0.000000e+00> : vector<4x384xf32>
    %9 = tpu.matmul %7, %8, %cst_4 {dimension_numbers = #tpu.dot_dimension_numbers<[1], [0], [0], [1], [0, 0, 1, 1], [], []>} : vector<4x4xf32>, vector<4x384xf32>, vector<4x384xf32> -> vector<4x384xf32>
    %10 = arith.addf %2, %9 : vector<4x384xf32>
    %c1 = arith.constant 1 : index
    %c0_5 = arith.constant 0 : index
    %c0_6 = arith.constant 0 : index
    %11 = vector.load %arg4[%c1, %c0_5, %c0_6] : memref<9x4x4xf32, #tpu.memory_space<vmem>>, vector<1x4x4xf32>
    %12 = vector.shape_cast %11 : vector<1x4x4xf32> to vector<4x4xf32>
    %13 = vector.extract_strided_slice %5 {offsets = [0, 1], sizes = [4, 384], strides = [1, 1]} : vector<4x512xf32> to vector<4x384xf32>
    %cst_7 = arith.constant dense<0.000000e+00> : vector<4x384xf32>
    %14 = tpu.matmul %12, %13, %cst_7 {dimension_numbers = #tpu.dot_dimension_numbers<[1], [0], [0], [1], [0, 0, 1, 1], [], []>} : vector<4x4xf32>, vector<4x384xf32>, vector<4x384xf32> -> vector<4x384xf32>
    %15 = arith.addf %10, %14 : vector<4x384xf32>
    %c2 = arith.constant 2 : index
    %c0_8 = arith.constant 0 : index
    %c0_9 = arith.constant 0 : index
    %16 = vector.load %arg4[%c2, %c0_8, %c0_9] : memref<9x4x4xf32, #tpu.memory_space<vmem>>, vector<1x4x4xf32>
    %17 = vector.shape_cast %16 : vector<1x4x4xf32> to vector<4x4xf32>
    %18 = vector.extract_strided_slice %5 {offsets = [0, 2], sizes = [4, 384], strides = [1, 1]} : vector<4x512xf32> to vector<4x384xf32>
    %cst_10 = arith.constant dense<0.000000e+00> : vector<4x384xf32>
    %19 = tpu.matmul %17, %18, %cst_10 {dimension_numbers = #tpu.dot_dimension_numbers<[1], [0], [0], [1], [0, 0, 1, 1], [], []>} : vector<4x4xf32>, vector<4x384xf32>, vector<4x384xf32> -> vector<4x384xf32>
    %20 = arith.addf %15, %19 : vector<4x384xf32>
    %c3 = arith.constant 3 : index
    %c0_11 = arith.constant 0 : index
    %c0_12 = arith.constant 0 : index
    %21 = vector.load %arg4[%c3, %c0_11, %c0_12] : memref<9x4x4xf32, #tpu.memory_space<vmem>>, vector<1x4x4xf32>
    %22 = vector.shape_cast %21 : vector<1x4x4xf32> to vector<4x4xf32>
    %23 = vector.extract_strided_slice %5 {offsets = [0, 18], sizes = [4, 384], strides = [1, 1]} : vector<4x512xf32> to vector<4x384xf32>
    %cst_13 = arith.constant dense<0.000000e+00> : vector<4x384xf32>
    %24 = tpu.matmul %22, %23, %cst_13 {dimension_numbers = #tpu.dot_dimension_numbers<[1], [0], [0], [1], [0, 0, 1, 1], [], []>} : vector<4x4xf32>, vector<4x384xf32>, vector<4x384xf32> -> vector<4x384xf32>
    %25 = arith.addf %20, %24 : vector<4x384xf32>
    %c4 = arith.constant 4 : index
    %c0_14 = arith.constant 0 : index
    %c0_15 = arith.constant 0 : index
    %26 = vector.load %arg4[%c4, %c0_14, %c0_15] : memref<9x4x4xf32, #tpu.memory_space<vmem>>, vector<1x4x4xf32>
    %27 = vector.shape_cast %26 : vector<1x4x4xf32> to vector<4x4xf32>
    %28 = vector.extract_strided_slice %5 {offsets = [0, 19], sizes = [4, 384], strides = [1, 1]} : vector<4x512xf32> to vector<4x384xf32>
    %cst_16 = arith.constant dense<0.000000e+00> : vector<4x384xf32>
    %29 = tpu.matmul %27, %28, %cst_16 {dimension_numbers = #tpu.dot_dimension_numbers<[1], [0], [0], [1], [0, 0, 1, 1], [], []>} : vector<4x4xf32>, vector<4x384xf32>, vector<4x384xf32> -> vector<4x384xf32>
    %30 = arith.addf %25, %29 : vector<4x384xf32>
    %c5 = arith.constant 5 : index
    %c0_17 = arith.constant 0 : index
    %c0_18 = arith.constant 0 : index
    %31 = vector.load %arg4[%c5, %c0_17, %c0_18] : memref<9x4x4xf32, #tpu.memory_space<vmem>>, vector<1x4x4xf32>
    %32 = vector.shape_cast %31 : vector<1x4x4xf32> to vector<4x4xf32>
    %33 = vector.extract_strided_slice %5 {offsets = [0, 20], sizes = [4, 384], strides = [1, 1]} : vector<4x512xf32> to vector<4x384xf32>
    %cst_19 = arith.constant dense<0.000000e+00> : vector<4x384xf32>
    %34 = tpu.matmul %32, %33, %cst_19 {dimension_numbers = #tpu.dot_dimension_numbers<[1], [0], [0], [1], [0, 0, 1, 1], [], []>} : vector<4x4xf32>, vector<4x384xf32>, vector<4x384xf32> -> vector<4x384xf32>
    %35 = arith.addf %30, %34 : vector<4x384xf32>
    %c6 = arith.constant 6 : index
    %c0_20 = arith.constant 0 : index
    %c0_21 = arith.constant 0 : index
    %36 = vector.load %arg4[%c6, %c0_20, %c0_21] : memref<9x4x4xf32, #tpu.memory_space<vmem>>, vector<1x4x4xf32>
    %37 = vector.shape_cast %36 : vector<1x4x4xf32> to vector<4x4xf32>
    %38 = vector.extract_strided_slice %5 {offsets = [0, 36], sizes = [4, 384], strides = [1, 1]} : vector<4x512xf32> to vector<4x384xf32>
    %cst_22 = arith.constant dense<0.000000e+00> : vector<4x384xf32>
    %39 = tpu.matmul %37, %38, %cst_22 {dimension_numbers = #tpu.dot_dimension_numbers<[1], [0], [0], [1], [0, 0, 1, 1], [], []>} : vector<4x4xf32>, vector<4x384xf32>, vector<4x384xf32> -> vector<4x384xf32>
    %40 = arith.addf %35, %39 : vector<4x384xf32>
    %c7 = arith.constant 7 : index
    %c0_23 = arith.constant 0 : index
    %c0_24 = arith.constant 0 : index
    %41 = vector.load %arg4[%c7, %c0_23, %c0_24] : memref<9x4x4xf32, #tpu.memory_space<vmem>>, vector<1x4x4xf32>
    %42 = vector.shape_cast %41 : vector<1x4x4xf32> to vector<4x4xf32>
    %43 = vector.extract_strided_slice %5 {offsets = [0, 37], sizes = [4, 384], strides = [1, 1]} : vector<4x512xf32> to vector<4x384xf32>
    %cst_25 = arith.constant dense<0.000000e+00> : vector<4x384xf32>
    %44 = tpu.matmul %42, %43, %cst_25 {dimension_numbers = #tpu.dot_dimension_numbers<[1], [0], [0], [1], [0, 0, 1, 1], [], []>} : vector<4x4xf32>, vector<4x384xf32>, vector<4x384xf32> -> vector<4x384xf32>
    %45 = arith.addf %40, %44 : vector<4x384xf32>
    %c8 = arith.constant 8 : index
    %c0_26 = arith.constant 0 : index
    %c0_27 = arith.constant 0 : index
    %46 = vector.load %arg4[%c8, %c0_26, %c0_27] : memref<9x4x4xf32, #tpu.memory_space<vmem>>, vector<1x4x4xf32>
    %47 = vector.shape_cast %46 : vector<1x4x4xf32> to vector<4x4xf32>
    %48 = vector.extract_strided_slice %5 {offsets = [0, 38], sizes = [4, 384], strides = [1, 1]} : vector<4x512xf32> to vector<4x384xf32>
    %cst_28 = arith.constant dense<0.000000e+00> : vector<4x384xf32>
    %49 = tpu.matmul %47, %48, %cst_28 {dimension_numbers = #tpu.dot_dimension_numbers<[1], [0], [0], [1], [0, 0, 1, 1], [], []>} : vector<4x4xf32>, vector<4x384xf32>, vector<4x384xf32> -> vector<4x384xf32>
    %50 = arith.addf %45, %49 : vector<4x384xf32>
    %c0_29 = arith.constant 0 : index
    %c0_30 = arith.constant 0 : index
    %51 = arith.index_cast %1 : i32 to index
    %52 = vector.load %arg3[%c0_29, %c0_30, %51] : memref<1x4x512xf32, #tpu.memory_space<vmem>>, vector<1x4x512xf32>
    %53 = vector.shape_cast %52 : vector<1x4x512xf32> to vector<4x512xf32>
    %c0_31 = arith.constant 0 : index
    %c0_32 = arith.constant 0 : index
    %c0_33 = arith.constant 0 : index
    %54 = vector.load %arg5[%c0_31, %c0_32, %c0_33] : memref<9x4x4xf32, #tpu.memory_space<vmem>>, vector<1x4x4xf32>
    %55 = vector.shape_cast %54 : vector<1x4x4xf32> to vector<4x4xf32>
    %56 = vector.extract_strided_slice %53 {offsets = [0, 0], sizes = [4, 384], strides = [1, 1]} : vector<4x512xf32> to vector<4x384xf32>
    %cst_34 = arith.constant dense<0.000000e+00> : vector<4x384xf32>
    %57 = tpu.matmul %55, %56, %cst_34 {dimension_numbers = #tpu.dot_dimension_numbers<[1], [0], [0], [1], [0, 0, 1, 1], [], []>} : vector<4x4xf32>, vector<4x384xf32>, vector<4x384xf32> -> vector<4x384xf32>
    %58 = arith.addf %50, %57 : vector<4x384xf32>
    %c1_35 = arith.constant 1 : index
    %c0_36 = arith.constant 0 : index
    %c0_37 = arith.constant 0 : index
    %59 = vector.load %arg5[%c1_35, %c0_36, %c0_37] : memref<9x4x4xf32, #tpu.memory_space<vmem>>, vector<1x4x4xf32>
    %60 = vector.shape_cast %59 : vector<1x4x4xf32> to vector<4x4xf32>
    %61 = vector.extract_strided_slice %53 {offsets = [0, 1], sizes = [4, 384], strides = [1, 1]} : vector<4x512xf32> to vector<4x384xf32>
    %cst_38 = arith.constant dense<0.000000e+00> : vector<4x384xf32>
    %62 = tpu.matmul %60, %61, %cst_38 {dimension_numbers = #tpu.dot_dimension_numbers<[1], [0], [0], [1], [0, 0, 1, 1], [], []>} : vector<4x4xf32>, vector<4x384xf32>, vector<4x384xf32> -> vector<4x384xf32>
    %63 = arith.addf %58, %62 : vector<4x384xf32>
    %c2_39 = arith.constant 2 : index
    %c0_40 = arith.constant 0 : index
    %c0_41 = arith.constant 0 : index
    %64 = vector.load %arg5[%c2_39, %c0_40, %c0_41] : memref<9x4x4xf32, #tpu.memory_space<vmem>>, vector<1x4x4xf32>
    %65 = vector.shape_cast %64 : vector<1x4x4xf32> to vector<4x4xf32>
    %66 = vector.extract_strided_slice %53 {offsets = [0, 2], sizes = [4, 384], strides = [1, 1]} : vector<4x512xf32> to vector<4x384xf32>
    %cst_42 = arith.constant dense<0.000000e+00> : vector<4x384xf32>
    %67 = tpu.matmul %65, %66, %cst_42 {dimension_numbers = #tpu.dot_dimension_numbers<[1], [0], [0], [1], [0, 0, 1, 1], [], []>} : vector<4x4xf32>, vector<4x384xf32>, vector<4x384xf32> -> vector<4x384xf32>
    %68 = arith.addf %63, %67 : vector<4x384xf32>
    %c3_43 = arith.constant 3 : index
    %c0_44 = arith.constant 0 : index
    %c0_45 = arith.constant 0 : index
    %69 = vector.load %arg5[%c3_43, %c0_44, %c0_45] : memref<9x4x4xf32, #tpu.memory_space<vmem>>, vector<1x4x4xf32>
    %70 = vector.shape_cast %69 : vector<1x4x4xf32> to vector<4x4xf32>
    %71 = vector.extract_strided_slice %53 {offsets = [0, 18], sizes = [4, 384], strides = [1, 1]} : vector<4x512xf32> to vector<4x384xf32>
    %cst_46 = arith.constant dense<0.000000e+00> : vector<4x384xf32>
    %72 = tpu.matmul %70, %71, %cst_46 {dimension_numbers = #tpu.dot_dimension_numbers<[1], [0], [0], [1], [0, 0, 1, 1], [], []>} : vector<4x4xf32>, vector<4x384xf32>, vector<4x384xf32> -> vector<4x384xf32>
    %73 = arith.addf %68, %72 : vector<4x384xf32>
    %c4_47 = arith.constant 4 : index
    %c0_48 = arith.constant 0 : index
    %c0_49 = arith.constant 0 : index
    %74 = vector.load %arg5[%c4_47, %c0_48, %c0_49] : memref<9x4x4xf32, #tpu.memory_space<vmem>>, vector<1x4x4xf32>
    %75 = vector.shape_cast %74 : vector<1x4x4xf32> to vector<4x4xf32>
    %76 = vector.extract_strided_slice %53 {offsets = [0, 19], sizes = [4, 384], strides = [1, 1]} : vector<4x512xf32> to vector<4x384xf32>
    %cst_50 = arith.constant dense<0.000000e+00> : vector<4x384xf32>
    %77 = tpu.matmul %75, %76, %cst_50 {dimension_numbers = #tpu.dot_dimension_numbers<[1], [0], [0], [1], [0, 0, 1, 1], [], []>} : vector<4x4xf32>, vector<4x384xf32>, vector<4x384xf32> -> vector<4x384xf32>
    %78 = arith.addf %73, %77 : vector<4x384xf32>
    %c5_51 = arith.constant 5 : index
    %c0_52 = arith.constant 0 : index
    %c0_53 = arith.constant 0 : index
    %79 = vector.load %arg5[%c5_51, %c0_52, %c0_53] : memref<9x4x4xf32, #tpu.memory_space<vmem>>, vector<1x4x4xf32>
    %80 = vector.shape_cast %79 : vector<1x4x4xf32> to vector<4x4xf32>
    %81 = vector.extract_strided_slice %53 {offsets = [0, 20], sizes = [4, 384], strides = [1, 1]} : vector<4x512xf32> to vector<4x384xf32>
    %cst_54 = arith.constant dense<0.000000e+00> : vector<4x384xf32>
    %82 = tpu.matmul %80, %81, %cst_54 {dimension_numbers = #tpu.dot_dimension_numbers<[1], [0], [0], [1], [0, 0, 1, 1], [], []>} : vector<4x4xf32>, vector<4x384xf32>, vector<4x384xf32> -> vector<4x384xf32>
    %83 = arith.addf %78, %82 : vector<4x384xf32>
    %c6_55 = arith.constant 6 : index
    %c0_56 = arith.constant 0 : index
    %c0_57 = arith.constant 0 : index
    %84 = vector.load %arg5[%c6_55, %c0_56, %c0_57] : memref<9x4x4xf32, #tpu.memory_space<vmem>>, vector<1x4x4xf32>
    %85 = vector.shape_cast %84 : vector<1x4x4xf32> to vector<4x4xf32>
    %86 = vector.extract_strided_slice %53 {offsets = [0, 36], sizes = [4, 384], strides = [1, 1]} : vector<4x512xf32> to vector<4x384xf32>
    %cst_58 = arith.constant dense<0.000000e+00> : vector<4x384xf32>
    %87 = tpu.matmul %85, %86, %cst_58 {dimension_numbers = #tpu.dot_dimension_numbers<[1], [0], [0], [1], [0, 0, 1, 1], [], []>} : vector<4x4xf32>, vector<4x384xf32>, vector<4x384xf32> -> vector<4x384xf32>
    %88 = arith.addf %83, %87 : vector<4x384xf32>
    %c7_59 = arith.constant 7 : index
    %c0_60 = arith.constant 0 : index
    %c0_61 = arith.constant 0 : index
    %89 = vector.load %arg5[%c7_59, %c0_60, %c0_61] : memref<9x4x4xf32, #tpu.memory_space<vmem>>, vector<1x4x4xf32>
    %90 = vector.shape_cast %89 : vector<1x4x4xf32> to vector<4x4xf32>
    %91 = vector.extract_strided_slice %53 {offsets = [0, 37], sizes = [4, 384], strides = [1, 1]} : vector<4x512xf32> to vector<4x384xf32>
    %cst_62 = arith.constant dense<0.000000e+00> : vector<4x384xf32>
    %92 = tpu.matmul %90, %91, %cst_62 {dimension_numbers = #tpu.dot_dimension_numbers<[1], [0], [0], [1], [0, 0, 1, 1], [], []>} : vector<4x4xf32>, vector<4x384xf32>, vector<4x384xf32> -> vector<4x384xf32>
    %93 = arith.addf %88, %92 : vector<4x384xf32>
    %c8_63 = arith.constant 8 : index
    %c0_64 = arith.constant 0 : index
    %c0_65 = arith.constant 0 : index
    %94 = vector.load %arg5[%c8_63, %c0_64, %c0_65] : memref<9x4x4xf32, #tpu.memory_space<vmem>>, vector<1x4x4xf32>
    %95 = vector.shape_cast %94 : vector<1x4x4xf32> to vector<4x4xf32>
    %96 = vector.extract_strided_slice %53 {offsets = [0, 38], sizes = [4, 384], strides = [1, 1]} : vector<4x512xf32> to vector<4x384xf32>
    %cst_66 = arith.constant dense<0.000000e+00> : vector<4x384xf32>
    %97 = tpu.matmul %95, %96, %cst_66 {dimension_numbers = #tpu.dot_dimension_numbers<[1], [0], [0], [1], [0, 0, 1, 1], [], []>} : vector<4x4xf32>, vector<4x384xf32>, vector<4x384xf32> -> vector<4x384xf32>
    %98 = arith.addf %93, %97 : vector<4x384xf32>
    %c0_67 = arith.constant 0 : index
    %c0_68 = arith.constant 0 : index
    %c0_69 = arith.constant 0 : index
    %99 = vector.load %arg7[%c0_67, %c0_68, %c0_69] : memref<1x4x384xf32, #tpu.memory_space<vmem>>, vector<1x4x384xf32>
    %100 = vector.shape_cast %99 : vector<1x4x384xf32> to vector<4x384xf32>
    %101 = vector.shape_cast %98 : vector<4x384xf32> to vector<1x4x384xf32>
    tpu.vector_store %arg7[%c0_67, %c0_68, %c0_69], %101 {strides = array<i32>} : memref<1x4x384xf32, #tpu.memory_space<vmem>>, vector<1x4x384xf32>,
    %c0_70 = arith.constant 0 : index
    %c0_71 = arith.constant 0 : index
    %102 = vector.load %arg6[%c0_70, %c0_71] : memref<1x384xf32, #tpu.memory_space<vmem>>, vector<1x384xf32>
    %103 = vector.broadcast %102 : vector<1x384xf32> to vector<4x384xf32>
    %104 = arith.mulf %98, %103 : vector<4x384xf32>
    %cst_72 = arith.constant dense<0.000000e+00> : vector<4xf32>
    %105 = vector.multi_reduction <add>, %104, %cst_72 [1] : vector<4x384xf32> to vector<4xf32>
    %106 = vector.shape_cast %105 : vector<4xf32> to vector<4x1xf32>
    %107 = arith.mulf %104, %98 : vector<4x384xf32>
    %cst_73 = arith.constant dense<0.000000e+00> : vector<4xf32>
    %108 = vector.multi_reduction <add>, %107, %cst_73 [1] : vector<4x384xf32> to vector<4xf32>
    %109 = vector.shape_cast %108 : vector<4xf32> to vector<4x1xf32>
    %c0_74 = arith.constant 0 : index
    %c0_75 = arith.constant 0 : index
    %c0_76 = arith.constant 0 : index
    %c0_77 = arith.constant 0 : index
    %110 = vector.load %arg8[%c0_74, %c0_75, %c0_76, %c0_77] : memref<1x1x4x2xf32, #tpu.memory_space<vmem>>, vector<1x1x4x1xf32>
    %111 = vector.shape_cast %110 : vector<1x1x4x1xf32> to vector<4x1xf32>
    %112 = vector.shape_cast %106 : vector<4x1xf32> to vector<1x1x4x1xf32>
    tpu.vector_store %arg8[%c0_74, %c0_75, %c0_76, %c0_77], %112 {strides = array<i32>} : memref<1x1x4x2xf32, #tpu.memory_space<vmem>>, vector<1x1x4x1xf32>,
    %c0_78 = arith.constant 0 : index
    %c0_79 = arith.constant 0 : index
    %c0_80 = arith.constant 0 : index
    %c1_81 = arith.constant 1 : index
    %113 = vector.load %arg8[%c0_78, %c0_79, %c0_80, %c1_81] : memref<1x1x4x2xf32, #tpu.memory_space<vmem>>, vector<1x1x4x1xf32>
    %114 = vector.shape_cast %113 : vector<1x1x4x1xf32> to vector<4x1xf32>
    %115 = vector.shape_cast %109 : vector<4x1xf32> to vector<1x1x4x1xf32>
    tpu.vector_store %arg8[%c0_78, %c0_79, %c0_80, %c1_81], %115 {strides = array<i32>} : memref<1x1x4x2xf32, #tpu.memory_space<vmem>>, vector<1x1x4x1xf32>,
    return
  }
  func.func @transform_0(%arg0: i32, %arg1: i32) -> (i32, i32, i32) {
    %c0_i32 = arith.constant 0 : i32
    %c0_i32_0 = arith.constant 0 : i32
    %c0_i32_1 = arith.constant 0 : i32
    return %arg0, %c0_i32, %c0_i32_0 : i32, i32, i32
  }
  func.func @transform_1(%arg0: i32, %arg1: i32) -> (i32, i32, i32) {
    %c0_i32 = arith.constant 0 : i32
    %c0_i32_0 = arith.constant 0 : i32
    %c0_i32_1 = arith.constant 0 : i32
    return %arg0, %c0_i32, %c0_i32_0 : i32, i32, i32
  }
  func.func @transform_2(%arg0: i32, %arg1: i32) -> (i32, i32, i32) {
    %c0_i32 = arith.constant 0 : i32
    %c0_i32_0 = arith.constant 0 : i32
    %c0_i32_1 = arith.constant 0 : i32
    %c0_i32_2 = arith.constant 0 : i32
    return %c0_i32, %c0_i32_0, %c0_i32_1 : i32, i32, i32
  }
  func.func @transform_3(%arg0: i32, %arg1: i32) -> (i32, i32, i32) {
    %c0_i32 = arith.constant 0 : i32
    %c0_i32_0 = arith.constant 0 : i32
    %c0_i32_1 = arith.constant 0 : i32
    %c0_i32_2 = arith.constant 0 : i32
    return %c0_i32, %c0_i32_0, %c0_i32_1 : i32, i32, i32
  }
  func.func @transform_4(%arg0: i32, %arg1: i32) -> (i32, i32) {
    %c0_i32 = arith.constant 0 : i32
    %c0_i32_0 = arith.constant 0 : i32
    return %c0_i32, %arg1 : i32, i32
  }
  func.func @transform_5(%arg0: i32, %arg1: i32) -> (i32, i32, i32) {
    %c0_i32 = arith.constant 0 : i32
    %c0_i32_0 = arith.constant 0 : i32
    return %arg0, %c0_i32, %arg1 : i32, i32, i32
  }
  func.func @transform_6(%arg0: i32, %arg1: i32) -> (i32, i32, i32, i32) {
    %c0_i32 = arith.constant 0 : i32
    %c0_i32_0 = arith.constant 0 : i32
    %c0_i32_1 = arith.constant 0 : i32
    return %arg0, %arg1, %c0_i32, %c0_i32_0 : i32, i32, i32, i32
  }
}

module attributes {stable_mosaic.version = 11 : i64} {
  func.func @kernel(%arg0: i32, %arg1: i32, %arg2: memref<1x4x512xf32, #tpu.memory_space<vmem>>, %arg3: memref<9x4x4xf32, #tpu.memory_space<vmem>>, %arg4: memref<4x1xf32, #tpu.memory_space<vmem>>, %arg5: memref<4x1xf32, #tpu.memory_space<vmem>>, %arg6: memref<1x512xf32, #tpu.memory_space<vmem>>, %arg7: memref<1x384xf32, #tpu.memory_space<vmem>>, %arg8: memref<1x4x384xf32, #tpu.memory_space<vmem>>, %arg9: memref<1x1x4x2xf32, #tpu.memory_space<vmem>>) attributes {dimension_semantics = [#tpu.dimension_semantics<parallel>, #tpu.dimension_semantics<parallel>], iteration_bounds = array<i64: 2, 1>, scalar_prefetch = 0 : i64, scratch_operands = 0 : i64, tpu.core_type = #tpu.core_type<tc>, window_params = [{transform_indices = @transform_0, window_bounds = array<i64: 1, 4, 512>}, {pipeline_mode = #tpu.pipeline_mode<synchronous>, transform_indices = @transform_1, window_bounds = array<i64: 9, 4, 4>}, {pipeline_mode = #tpu.pipeline_mode<synchronous>, transform_indices = @transform_2, window_bounds = array<i64: 4, 1>}, {pipeline_mode = #tpu.pipeline_mode<synchronous>, transform_indices = @transform_3, window_bounds = array<i64: 4, 1>}, {pipeline_mode = #tpu.pipeline_mode<synchronous>, transform_indices = @transform_4, window_bounds = array<i64: 1, 512>}, {transform_indices = @transform_5, window_bounds = array<i64: 1, 384>}, {transform_indices = @transform_6, window_bounds = array<i64: 1, 4, 384>}, {transform_indices = @transform_7, window_bounds = array<i64: 1, 1, 4, 2>}]} {
    %c384_i32 = arith.constant 384 : i32
    %0 = arith.muli %arg1, %c384_i32 : i32
    %1 = tpu.assume_multiple %0, 128 : i32
    %cst = arith.constant 0.000000e+00 : f32
    %2 = vector.broadcast %cst : f32 to vector<4x384xf32>
    %c0 = arith.constant 0 : index
    %c0_0 = arith.constant 0 : index
    %3 = arith.index_cast %1 : i32 to index
    %4 = vector.load %arg2[%c0, %c0_0, %3] : memref<1x4x512xf32, #tpu.memory_space<vmem>>, vector<1x4x512xf32>
    %5 = vector.shape_cast %4 : vector<1x4x512xf32> to vector<4x512xf32>
    %c0_1 = arith.constant 0 : index
    %c0_2 = arith.constant 0 : index
    %6 = vector.load %arg4[%c0_1, %c0_2] : memref<4x1xf32, #tpu.memory_space<vmem>>, vector<4x1xf32>
    %c0_3 = arith.constant 0 : index
    %c0_4 = arith.constant 0 : index
    %7 = vector.load %arg5[%c0_3, %c0_4] : memref<4x1xf32, #tpu.memory_space<vmem>>, vector<4x1xf32>
    %c0_5 = arith.constant 0 : index
    %8 = arith.index_cast %1 : i32 to index
    %9 = vector.load %arg6[%c0_5, %8] : memref<1x512xf32, #tpu.memory_space<vmem>>, vector<1x512xf32>
    %10 = vector.broadcast %6 : vector<4x1xf32> to vector<4x512xf32>
    %11 = arith.mulf %5, %10 : vector<4x512xf32>
    %12 = vector.broadcast %7 : vector<4x1xf32> to vector<4x512xf32>
    %13 = arith.addf %11, %12 : vector<4x512xf32>
    %cst_6 = arith.constant 0.000000e+00 : f32
    %14 = vector.broadcast %cst_6 : f32 to vector<4x512xf32>
    %15 = arith.maximumf %13, %14 : vector<4x512xf32>
    %16 = vector.broadcast %9 : vector<1x512xf32> to vector<4x512xf32>
    %17 = arith.mulf %15, %16 : vector<4x512xf32>
    %c0_7 = arith.constant 0 : index
    %c0_8 = arith.constant 0 : index
    %c0_9 = arith.constant 0 : index
    %18 = vector.load %arg3[%c0_7, %c0_8, %c0_9] : memref<9x4x4xf32, #tpu.memory_space<vmem>>, vector<1x4x4xf32>
    %19 = vector.shape_cast %18 : vector<1x4x4xf32> to vector<4x4xf32>
    %20 = vector.extract_strided_slice %17 {offsets = [0, 0], sizes = [4, 384], strides = [1, 1]} : vector<4x512xf32> to vector<4x384xf32>
    %cst_10 = arith.constant dense<0.000000e+00> : vector<4x384xf32>
    %21 = tpu.matmul %19, %20, %cst_10 {dimension_numbers = #tpu.dot_dimension_numbers<[1], [0], [0], [1], [0, 0, 1, 1], [], []>} : vector<4x4xf32>, vector<4x384xf32>, vector<4x384xf32> -> vector<4x384xf32>
    %22 = arith.addf %2, %21 : vector<4x384xf32>
    %c1 = arith.constant 1 : index
    %c0_11 = arith.constant 0 : index
    %c0_12 = arith.constant 0 : index
    %23 = vector.load %arg3[%c1, %c0_11, %c0_12] : memref<9x4x4xf32, #tpu.memory_space<vmem>>, vector<1x4x4xf32>
    %24 = vector.shape_cast %23 : vector<1x4x4xf32> to vector<4x4xf32>
    %25 = vector.extract_strided_slice %17 {offsets = [0, 1], sizes = [4, 384], strides = [1, 1]} : vector<4x512xf32> to vector<4x384xf32>
    %cst_13 = arith.constant dense<0.000000e+00> : vector<4x384xf32>
    %26 = tpu.matmul %24, %25, %cst_13 {dimension_numbers = #tpu.dot_dimension_numbers<[1], [0], [0], [1], [0, 0, 1, 1], [], []>} : vector<4x4xf32>, vector<4x384xf32>, vector<4x384xf32> -> vector<4x384xf32>
    %27 = arith.addf %22, %26 : vector<4x384xf32>
    %c2 = arith.constant 2 : index
    %c0_14 = arith.constant 0 : index
    %c0_15 = arith.constant 0 : index
    %28 = vector.load %arg3[%c2, %c0_14, %c0_15] : memref<9x4x4xf32, #tpu.memory_space<vmem>>, vector<1x4x4xf32>
    %29 = vector.shape_cast %28 : vector<1x4x4xf32> to vector<4x4xf32>
    %30 = vector.extract_strided_slice %17 {offsets = [0, 2], sizes = [4, 384], strides = [1, 1]} : vector<4x512xf32> to vector<4x384xf32>
    %cst_16 = arith.constant dense<0.000000e+00> : vector<4x384xf32>
    %31 = tpu.matmul %29, %30, %cst_16 {dimension_numbers = #tpu.dot_dimension_numbers<[1], [0], [0], [1], [0, 0, 1, 1], [], []>} : vector<4x4xf32>, vector<4x384xf32>, vector<4x384xf32> -> vector<4x384xf32>
    %32 = arith.addf %27, %31 : vector<4x384xf32>
    %c3 = arith.constant 3 : index
    %c0_17 = arith.constant 0 : index
    %c0_18 = arith.constant 0 : index
    %33 = vector.load %arg3[%c3, %c0_17, %c0_18] : memref<9x4x4xf32, #tpu.memory_space<vmem>>, vector<1x4x4xf32>
    %34 = vector.shape_cast %33 : vector<1x4x4xf32> to vector<4x4xf32>
    %35 = vector.extract_strided_slice %17 {offsets = [0, 18], sizes = [4, 384], strides = [1, 1]} : vector<4x512xf32> to vector<4x384xf32>
    %cst_19 = arith.constant dense<0.000000e+00> : vector<4x384xf32>
    %36 = tpu.matmul %34, %35, %cst_19 {dimension_numbers = #tpu.dot_dimension_numbers<[1], [0], [0], [1], [0, 0, 1, 1], [], []>} : vector<4x4xf32>, vector<4x384xf32>, vector<4x384xf32> -> vector<4x384xf32>
    %37 = arith.addf %32, %36 : vector<4x384xf32>
    %c4 = arith.constant 4 : index
    %c0_20 = arith.constant 0 : index
    %c0_21 = arith.constant 0 : index
    %38 = vector.load %arg3[%c4, %c0_20, %c0_21] : memref<9x4x4xf32, #tpu.memory_space<vmem>>, vector<1x4x4xf32>
    %39 = vector.shape_cast %38 : vector<1x4x4xf32> to vector<4x4xf32>
    %40 = vector.extract_strided_slice %17 {offsets = [0, 19], sizes = [4, 384], strides = [1, 1]} : vector<4x512xf32> to vector<4x384xf32>
    %cst_22 = arith.constant dense<0.000000e+00> : vector<4x384xf32>
    %41 = tpu.matmul %39, %40, %cst_22 {dimension_numbers = #tpu.dot_dimension_numbers<[1], [0], [0], [1], [0, 0, 1, 1], [], []>} : vector<4x4xf32>, vector<4x384xf32>, vector<4x384xf32> -> vector<4x384xf32>
    %42 = arith.addf %37, %41 : vector<4x384xf32>
    %c5 = arith.constant 5 : index
    %c0_23 = arith.constant 0 : index
    %c0_24 = arith.constant 0 : index
    %43 = vector.load %arg3[%c5, %c0_23, %c0_24] : memref<9x4x4xf32, #tpu.memory_space<vmem>>, vector<1x4x4xf32>
    %44 = vector.shape_cast %43 : vector<1x4x4xf32> to vector<4x4xf32>
    %45 = vector.extract_strided_slice %17 {offsets = [0, 20], sizes = [4, 384], strides = [1, 1]} : vector<4x512xf32> to vector<4x384xf32>
    %cst_25 = arith.constant dense<0.000000e+00> : vector<4x384xf32>
    %46 = tpu.matmul %44, %45, %cst_25 {dimension_numbers = #tpu.dot_dimension_numbers<[1], [0], [0], [1], [0, 0, 1, 1], [], []>} : vector<4x4xf32>, vector<4x384xf32>, vector<4x384xf32> -> vector<4x384xf32>
    %47 = arith.addf %42, %46 : vector<4x384xf32>
    %c6 = arith.constant 6 : index
    %c0_26 = arith.constant 0 : index
    %c0_27 = arith.constant 0 : index
    %48 = vector.load %arg3[%c6, %c0_26, %c0_27] : memref<9x4x4xf32, #tpu.memory_space<vmem>>, vector<1x4x4xf32>
    %49 = vector.shape_cast %48 : vector<1x4x4xf32> to vector<4x4xf32>
    %50 = vector.extract_strided_slice %17 {offsets = [0, 36], sizes = [4, 384], strides = [1, 1]} : vector<4x512xf32> to vector<4x384xf32>
    %cst_28 = arith.constant dense<0.000000e+00> : vector<4x384xf32>
    %51 = tpu.matmul %49, %50, %cst_28 {dimension_numbers = #tpu.dot_dimension_numbers<[1], [0], [0], [1], [0, 0, 1, 1], [], []>} : vector<4x4xf32>, vector<4x384xf32>, vector<4x384xf32> -> vector<4x384xf32>
    %52 = arith.addf %47, %51 : vector<4x384xf32>
    %c7 = arith.constant 7 : index
    %c0_29 = arith.constant 0 : index
    %c0_30 = arith.constant 0 : index
    %53 = vector.load %arg3[%c7, %c0_29, %c0_30] : memref<9x4x4xf32, #tpu.memory_space<vmem>>, vector<1x4x4xf32>
    %54 = vector.shape_cast %53 : vector<1x4x4xf32> to vector<4x4xf32>
    %55 = vector.extract_strided_slice %17 {offsets = [0, 37], sizes = [4, 384], strides = [1, 1]} : vector<4x512xf32> to vector<4x384xf32>
    %cst_31 = arith.constant dense<0.000000e+00> : vector<4x384xf32>
    %56 = tpu.matmul %54, %55, %cst_31 {dimension_numbers = #tpu.dot_dimension_numbers<[1], [0], [0], [1], [0, 0, 1, 1], [], []>} : vector<4x4xf32>, vector<4x384xf32>, vector<4x384xf32> -> vector<4x384xf32>
    %57 = arith.addf %52, %56 : vector<4x384xf32>
    %c8 = arith.constant 8 : index
    %c0_32 = arith.constant 0 : index
    %c0_33 = arith.constant 0 : index
    %58 = vector.load %arg3[%c8, %c0_32, %c0_33] : memref<9x4x4xf32, #tpu.memory_space<vmem>>, vector<1x4x4xf32>
    %59 = vector.shape_cast %58 : vector<1x4x4xf32> to vector<4x4xf32>
    %60 = vector.extract_strided_slice %17 {offsets = [0, 38], sizes = [4, 384], strides = [1, 1]} : vector<4x512xf32> to vector<4x384xf32>
    %cst_34 = arith.constant dense<0.000000e+00> : vector<4x384xf32>
    %61 = tpu.matmul %59, %60, %cst_34 {dimension_numbers = #tpu.dot_dimension_numbers<[1], [0], [0], [1], [0, 0, 1, 1], [], []>} : vector<4x4xf32>, vector<4x384xf32>, vector<4x384xf32> -> vector<4x384xf32>
    %62 = arith.addf %57, %61 : vector<4x384xf32>
    %c0_35 = arith.constant 0 : index
    %c0_36 = arith.constant 0 : index
    %c0_37 = arith.constant 0 : index
    %63 = vector.load %arg8[%c0_35, %c0_36, %c0_37] : memref<1x4x384xf32, #tpu.memory_space<vmem>>, vector<1x4x384xf32>
    %64 = vector.shape_cast %63 : vector<1x4x384xf32> to vector<4x384xf32>
    %65 = vector.shape_cast %62 : vector<4x384xf32> to vector<1x4x384xf32>
    tpu.vector_store %arg8[%c0_35, %c0_36, %c0_37], %65 {strides = array<i32>} : memref<1x4x384xf32, #tpu.memory_space<vmem>>, vector<1x4x384xf32>,
    %c0_38 = arith.constant 0 : index
    %c0_39 = arith.constant 0 : index
    %66 = vector.load %arg7[%c0_38, %c0_39] : memref<1x384xf32, #tpu.memory_space<vmem>>, vector<1x384xf32>
    %67 = vector.broadcast %66 : vector<1x384xf32> to vector<4x384xf32>
    %68 = arith.mulf %62, %67 : vector<4x384xf32>
    %cst_40 = arith.constant dense<0.000000e+00> : vector<4xf32>
    %69 = vector.multi_reduction <add>, %68, %cst_40 [1] : vector<4x384xf32> to vector<4xf32>
    %70 = vector.shape_cast %69 : vector<4xf32> to vector<4x1xf32>
    %71 = arith.mulf %68, %62 : vector<4x384xf32>
    %cst_41 = arith.constant dense<0.000000e+00> : vector<4xf32>
    %72 = vector.multi_reduction <add>, %71, %cst_41 [1] : vector<4x384xf32> to vector<4xf32>
    %73 = vector.shape_cast %72 : vector<4xf32> to vector<4x1xf32>
    %c0_42 = arith.constant 0 : index
    %c0_43 = arith.constant 0 : index
    %c0_44 = arith.constant 0 : index
    %c0_45 = arith.constant 0 : index
    %74 = vector.load %arg9[%c0_42, %c0_43, %c0_44, %c0_45] : memref<1x1x4x2xf32, #tpu.memory_space<vmem>>, vector<1x1x4x1xf32>
    %75 = vector.shape_cast %74 : vector<1x1x4x1xf32> to vector<4x1xf32>
    %76 = vector.shape_cast %70 : vector<4x1xf32> to vector<1x1x4x1xf32>
    tpu.vector_store %arg9[%c0_42, %c0_43, %c0_44, %c0_45], %76 {strides = array<i32>} : memref<1x1x4x2xf32, #tpu.memory_space<vmem>>, vector<1x1x4x1xf32>,
    %c0_46 = arith.constant 0 : index
    %c0_47 = arith.constant 0 : index
    %c0_48 = arith.constant 0 : index
    %c1_49 = arith.constant 1 : index
    %77 = vector.load %arg9[%c0_46, %c0_47, %c0_48, %c1_49] : memref<1x1x4x2xf32, #tpu.memory_space<vmem>>, vector<1x1x4x1xf32>
    %78 = vector.shape_cast %77 : vector<1x1x4x1xf32> to vector<4x1xf32>
    %79 = vector.shape_cast %73 : vector<4x1xf32> to vector<1x1x4x1xf32>
    tpu.vector_store %arg9[%c0_46, %c0_47, %c0_48, %c1_49], %79 {strides = array<i32>} : memref<1x1x4x2xf32, #tpu.memory_space<vmem>>, vector<1x1x4x1xf32>,
    return
  }
  func.func @transform_0(%arg0: i32, %arg1: i32) -> (i32, i32, i32) {
    %c0_i32 = arith.constant 0 : i32
    %c0_i32_0 = arith.constant 0 : i32
    %c0_i32_1 = arith.constant 0 : i32
    return %arg0, %c0_i32, %c0_i32_0 : i32, i32, i32
  }
  func.func @transform_1(%arg0: i32, %arg1: i32) -> (i32, i32, i32) {
    %c0_i32 = arith.constant 0 : i32
    %c0_i32_0 = arith.constant 0 : i32
    %c0_i32_1 = arith.constant 0 : i32
    %c0_i32_2 = arith.constant 0 : i32
    return %c0_i32, %c0_i32_0, %c0_i32_1 : i32, i32, i32
  }
  func.func @transform_2(%arg0: i32, %arg1: i32) -> (i32, i32) {
    %c0_i32 = arith.constant 0 : i32
    %c0_i32_0 = arith.constant 0 : i32
    %c0_i32_1 = arith.constant 0 : i32
    return %c0_i32, %c0_i32_0 : i32, i32
  }
  func.func @transform_3(%arg0: i32, %arg1: i32) -> (i32, i32) {
    %c0_i32 = arith.constant 0 : i32
    %c0_i32_0 = arith.constant 0 : i32
    %c0_i32_1 = arith.constant 0 : i32
    return %c0_i32, %c0_i32_0 : i32, i32
  }
  func.func @transform_4(%arg0: i32, %arg1: i32) -> (i32, i32) {
    %c0_i32 = arith.constant 0 : i32
    %c0_i32_0 = arith.constant 0 : i32
    %c0_i32_1 = arith.constant 0 : i32
    return %c0_i32, %c0_i32_0 : i32, i32
  }
  func.func @transform_5(%arg0: i32, %arg1: i32) -> (i32, i32) {
    %c0_i32 = arith.constant 0 : i32
    %c0_i32_0 = arith.constant 0 : i32
    return %c0_i32, %arg1 : i32, i32
  }
  func.func @transform_6(%arg0: i32, %arg1: i32) -> (i32, i32, i32) {
    %c0_i32 = arith.constant 0 : i32
    %c0_i32_0 = arith.constant 0 : i32
    return %arg0, %c0_i32, %arg1 : i32, i32, i32
  }
  func.func @transform_7(%arg0: i32, %arg1: i32) -> (i32, i32, i32, i32) {
    %c0_i32 = arith.constant 0 : i32
    %c0_i32_0 = arith.constant 0 : i32
    %c0_i32_1 = arith.constant 0 : i32
    return %arg0, %arg1, %c0_i32, %c0_i32_0 : i32, i32, i32, i32
  }
}

module attributes {stable_mosaic.version = 11 : i64} {
  func.func @_bn_relu_kernel(%arg0: i32, %arg1: i32, %arg2: memref<1x4x384xf32, #tpu.memory_space<vmem>>, %arg3: memref<4x1xf32, #tpu.memory_space<vmem>>, %arg4: memref<4x1xf32, #tpu.memory_space<vmem>>, %arg5: memref<1x4x384xf32, #tpu.memory_space<vmem>>) attributes {dimension_semantics = [#tpu.dimension_semantics<parallel>, #tpu.dimension_semantics<parallel>], iteration_bounds = array<i64: 2, 1>, scalar_prefetch = 0 : i64, scratch_operands = 0 : i64, tpu.core_type = #tpu.core_type<tc>, window_params = [{transform_indices = @transform_0, window_bounds = array<i64: 1, 4, 384>}, {pipeline_mode = #tpu.pipeline_mode<synchronous>, transform_indices = @transform_1, window_bounds = array<i64: 4, 1>}, {pipeline_mode = #tpu.pipeline_mode<synchronous>, transform_indices = @transform_2, window_bounds = array<i64: 4, 1>}, {transform_indices = @transform_3, window_bounds = array<i64: 1, 4, 384>}]} {
    %c0 = arith.constant 0 : index
    %c0_0 = arith.constant 0 : index
    %c0_1 = arith.constant 0 : index
    %0 = vector.load %arg2[%c0, %c0_0, %c0_1] : memref<1x4x384xf32, #tpu.memory_space<vmem>>, vector<1x4x384xf32>
    %1 = vector.shape_cast %0 : vector<1x4x384xf32> to vector<4x384xf32>
    %c0_2 = arith.constant 0 : index
    %c0_3 = arith.constant 0 : index
    %2 = vector.load %arg3[%c0_2, %c0_3] : memref<4x1xf32, #tpu.memory_space<vmem>>, vector<4x1xf32>
    %3 = vector.broadcast %2 : vector<4x1xf32> to vector<4x384xf32>
    %4 = arith.mulf %1, %3 : vector<4x384xf32>
    %c0_4 = arith.constant 0 : index
    %c0_5 = arith.constant 0 : index
    %5 = vector.load %arg4[%c0_4, %c0_5] : memref<4x1xf32, #tpu.memory_space<vmem>>, vector<4x1xf32>
    %6 = vector.broadcast %5 : vector<4x1xf32> to vector<4x384xf32>
    %7 = arith.addf %4, %6 : vector<4x384xf32>
    %cst = arith.constant 0.000000e+00 : f32
    %8 = vector.broadcast %cst : f32 to vector<4x384xf32>
    %9 = arith.maximumf %7, %8 : vector<4x384xf32>
    %c0_6 = arith.constant 0 : index
    %c0_7 = arith.constant 0 : index
    %c0_8 = arith.constant 0 : index
    %10 = vector.load %arg5[%c0_6, %c0_7, %c0_8] : memref<1x4x384xf32, #tpu.memory_space<vmem>>, vector<1x4x384xf32>
    %11 = vector.shape_cast %10 : vector<1x4x384xf32> to vector<4x384xf32>
    %12 = vector.shape_cast %9 : vector<4x384xf32> to vector<1x4x384xf32>
    tpu.vector_store %arg5[%c0_6, %c0_7, %c0_8], %12 {strides = array<i32>} : memref<1x4x384xf32, #tpu.memory_space<vmem>>, vector<1x4x384xf32>,
    return
  }
  func.func @transform_0(%arg0: i32, %arg1: i32) -> (i32, i32, i32) {
    %c0_i32 = arith.constant 0 : i32
    %c0_i32_0 = arith.constant 0 : i32
    return %arg0, %c0_i32, %arg1 : i32, i32, i32
  }
  func.func @transform_1(%arg0: i32, %arg1: i32) -> (i32, i32) {
    %c0_i32 = arith.constant 0 : i32
    %c0_i32_0 = arith.constant 0 : i32
    %c0_i32_1 = arith.constant 0 : i32
    return %c0_i32, %c0_i32_0 : i32, i32
  }
  func.func @transform_2(%arg0: i32, %arg1: i32) -> (i32, i32) {
    %c0_i32 = arith.constant 0 : i32
    %c0_i32_0 = arith.constant 0 : i32
    %c0_i32_1 = arith.constant 0 : i32
    return %c0_i32, %c0_i32_0 : i32, i32
  }
  func.func @transform_3(%arg0: i32, %arg1: i32) -> (i32, i32, i32) {
    %c0_i32 = arith.constant 0 : i32
    %c0_i32_0 = arith.constant 0 : i32
    return %arg0, %c0_i32, %arg1 : i32, i32, i32
  }
}

</mosaic_0001>

<bundles_post_ra>
// kernel: tile.0
= control target key start
LH: loop header
LB: loop body
LE: loop exit
PB: predicated region body
PF: predicated region fallthrough
CT: control target
= control target key end

     0   :  { %s34_s8 = smov 125   ;;  %vm7_vm0 = vcmask 7168   ;;  %s35_s11 = smov 126   ;;  %s61_s0 = inlined_call_operand.vmem [shape: f32[4,4], index: 0, kind: input, shape index: {}]   ;;  %s62_s1 = inlined_call_operand.vmem [shape: f32[16,1], index: 1, kind: output, shape index: {}]  }
   0x1   :  { %v4_v0 = vld [vmem:[%s61_s0] sm:$0xf]  ;;  %s33_s0 = smov 127  }
   0x2   :  { %5 = vst [vmem:[#allocation0] sm:$0xf] %v4_v0 }
   0x9   :  { %v9_v1 = vld [vmem:[#allocation0] sm:$0xf]  }
   0xa   :  { %v21_v2 = vld [vmem:[#allocation0] sm:$0xf]   ;;  %10 = vrot.lane.b32.xlu0 %v9_v1, %s33_s0 }
   0xb   :  { %22 = vrot.lane.b32.xlu1 %v21_v2, %s34_s8  ;;  %v6_v3 = vld [vmem:[#allocation0] sm:$0xf]  }
   0xc   :  { %v15_v4 = vld [vmem:[#allocation0] sm:$0xf]   ;;  %8 = vst.msk [vmem:[%s62_s1] ss:$4 sm:$0xf] %vm7_vm0, %v6_v3  }
   0xe   :  { %16 = vrot.lane.b32.xlu0 %v15_v4, %s35_s11 }
  0x7c   :  { %v11_v5 = vpop.permute.xlu0 %10  }
  0x7d   :  { %v23_v6 = vpop.permute.xlu1 %22   ;;  %27 = vst.msk [vmem:[%s62_s1 + $0x1] ss:$4 sm:$0xf] %vm7_vm0, %v11_v5  }
  0x7e   :  { %29 = vst.msk [vmem:[%s62_s1 + $0x3] ss:$4 sm:$0xf] %vm7_vm0, %v23_v6  }
  0x80   :  { %v17_v7 = vpop.permute.xlu0 %16  }
  0x81   :  { %28 = vst.msk [vmem:[%s62_s1 + $0x2] ss:$4 sm:$0xf] %vm7_vm0, %v17_v7  }

// kernel: tile.8
= control target key start
LH: loop header
LB: loop body
LE: loop exit
PB: predicated region body
PF: predicated region fallthrough
CT: control target
= control target key end

     0   :  { %s22_s0 = inlined_call_operand.vmem [shape: f32[4], index: 0, kind: input, shape index: {}]   ;;  %s23_s1 = inlined_call_operand.vmem [shape: f32[4,4], index: 1, kind: output, shape index: {}]  }
   0x1   :  { %v4_v0 = vld [vmem:[%s22_s0] ss:$0 sm:$0xff] }
   0x2   :  { %5 = vst [vmem:[%s23_s1] sm:$0xf] %v4_v0 }

// kernel: decoder_block.4
= control target key start
LH: loop header
LB: loop body
LE: loop exit
PB: predicated region body
PF: predicated region fallthrough
CT: control target
= control target key end

     0   :  { %s383_s12 = smov 0   ;;  %s412_s0 = inlined_call_operand.vmem [shape: f32[2,8,64], index: 0, kind: input, shape index: {}]   ;;  %s413_s1 = inlined_call_operand.vmem [shape: f32[16,8], index: 1, kind: input, shape index: {}]   ;;  %s414_s2 = inlined_call_operand.vmem [shape: f32[16,1], index: 2, kind: input, shape index: {}]   ;;  %s415_s3 = inlined_call_operand.vmem [shape: f32[2,16,64], index: 3, kind: output, shape index: {}]  }
   0x1 LB: > { %s323_s13 = sadd.s32 4294967295, %s360_s12   ;;  %p327_p0 = scmp.ge.s32.totalorder %s360_s12, 1  ;;  %s360_s12 = sphi %s383_s12, %s13_s12  }
   0x2   : > { %p136_p1 = scmp.lt.s32.totalorder %s360_s12, 3 }
   0x4   : > { %p137_p2 = pnand %p327_p0, %p136_p1 }
   0x5   : > { %p159_p3 = scmp.lt.s32.totalorder (!%p137_p2), %s323_s13, 1  ;;  %v168_v0 = vld [vmem:[%s413_s1] sm:$0xff] (!%p137_p2)  ;;  %vm183_vm0 = vcmask (!%p137_p2), 64512   ;;  %v362_v2 = vmov (!%p137_p2), 0   ;;  %v172_v3 = vld [vmem:[%s414_s2 + $0x8] sm:$0xff] (!%p137_p2)  ;;  %vm265_vm1 = vcmask (!%p137_p2), 523264  }
   0x6   : > { %140 = sbr.rel (%p137_p2) target bundleno = 235 (0xeb), region = 32  ;;  %v171_v1 = vld [vmem:[%s414_s2] sm:$0xff] (!%p137_p2)  ;;  %341 = vmatprep.mubr.msk.f32.mxu0 (!%p137_p2), %vm183_vm0, %v168_v0  ;;  %353 = vset.pattern.permute.xlu0 (!%p137_p2), %v362_v2  ;;  %v169_v5 = vld [vmem:[%s413_s1 + $0x8] sm:$0xff] (!%p137_p2) }
   0x7   : > { %175 = vperm.xlu0 (!%p137_p2), %353, %v171_v1  }
   0xb   : > { %180 = vperm.xlu0 (!%p137_p2), %353, %v172_v3  }
   0xd   : > { %s417_s13 = smov (!%p159_p3, %s323_s13), 1 }
   0xe   : > { %s328_s20 = sshll.u32 %s417_s13, 3  ;;  %s335_s26 = sshll.u32 %s417_s13, 4 }
   0xf   : > { %s162_s23 = scalar_lea.vmem %s412_s0, %s328_s20  ;;  %s167_s29 = scalar_lea.vmem %s415_s3, %s335_s26 }
  0x10   : > { %v170_v4 = vld [vmem:[%s162_s23] sm:$0xff] }
  0x11   : > { %339 = vmatprep.subr.mxu0 %v170_v4 }
  0x12   : > { %340 = vmatpush3.msra.mxu0 %v170_v4 }
  0x13   : > { %342 = vmatmul.mubr.msk.f32.vlgmr.msra.gmra.mrb[0].mxu0 %vm183_vm0, %v169_v5 }
  0x86   : > { %v176_v6 = vpop.permute.xlu0 %175 }
  0x8a   : > { %v181_v7 = vpop.permute.xlu0 %180 }
  0xe6   : > { %v343_v8 = vpop.f32.mrb[0].mxu0 }
  0xe7   : > { %v262_v9 = vadd.f32 %v343_v8, %v181_v7  ;;  %v256_v10 = vpop.f32.mrb[1].mxu0 }
  0xe8   : > { %v257_v11 = vadd.f32 %v256_v10, %v176_v6 }
  0xe9   : > { %267 = vst.msk [vmem:[%s167_s29 + $0x8] sm:$0xff] %vm265_vm1, %v262_v9 }
  0xea   : > { %266 = vst.msk [vmem:[%s167_s29] sm:$0xff] %vm265_vm1, %v257_v11 }
  0xeb PF: > { %s13_s12 = sadd.s32 1, %s360_s12  }
  0xec   : > { %p10_p4 = scmp.ge.s32.totalorder %s13_s12, 4  }
  0xee   :  { %12 = sbr.rel (!%p10_p4) target bundleno = 1 (0x1), region = 62 }

// kernel: decoder_block.7
= control target key start
LH: loop header
LB: loop body
LE: loop exit
PB: predicated region body
PF: predicated region fallthrough
CT: control target
= control target key end

     0   :  { %s416_s12 = smov 0   ;;  %s418_s13 = smov 0   ;;  %s455_s0 = inlined_call_operand.vmem [shape: f32[2,4,384], index: 0, kind: input, shape index: {}]   ;;  %s456_s1 = inlined_call_operand.vmem [shape: f32[4,1], index: 1, kind: input, shape index: {}]   ;;  %s457_s2 = inlined_call_operand.vmem [shape: f32[4,1], index: 2, kind: input, shape index: {}]   ;;  %s458_s3 = inlined_call_operand.vmem [shape: f32[2,4,384], index: 3, kind: output, shape index: {}]  }
   0x1   :  { %s420_s14 = smov 0  }
   0x2 LB: > { %s25_s15 = sadd.s32 1, %s388_s13  ;;  %p337_p0 = scmp.ge.s32.totalorder %s392_s14, 1  ;;  %s392_s14 = sphi %s420_s14, %s13_s14   ;;  %s388_s13 = sphi %s418_s13, %s460_s13   ;;  %s384_s12 = sphi %s416_s12, %s459_s12  }
   0x3   : > { %p27_p1 = scmp.ge.s32.totalorder %s25_s15, 2  ;;  %p158_p2 = scmp.lt.s32.totalorder %s392_s14, 3 }
   0x5   : > { %s462_s15 = smov (%p27_p1, %s25_s15), 0  ;;  %p159_p3 = pnand %p337_p0, %p158_p2 }
   0x6   : > { %v212_v0 = vld [vmem:[%s456_s1] sm:$0xf] (!%p159_p3)  ;;  %v394_v1 = vmov (!%p159_p3), 0   ;;  %p191_p4 = scmp.lt.s32.totalorder (!%p159_p3), %s384_s12, 1  ;;  %v395_v3 = vmov (!%p159_p3), 839922192   ;;  %v220_v5 = vlaneseq (!%p159_p3) }
   0x7   : > { %162 = sbr.rel (%p159_p3) target bundleno = 147 (0x93), region = 32  ;;  %369 = vset.pattern.permute.xlu0 (!%p159_p3), %v394_v1  ;;  %v227_v2 = vld [vmem:[%s457_s2] sm:$0xf] (!%p159_p3)  ;;  %v218_v4 = vunpack.c.l.s4 (!%p159_p3), %v395_v3 }
   0x8   : > { %215 = vperm.xlu0 (!%p159_p3), %369, %v212_v0   ;;  %v221_v7 = vshrl.u32 (!%p159_p3), %v220_v5, 7 }
   0x9   : > { %v219_v6 = vunpack.c.0.s8 (!%p159_p3), %v218_v4 }
   0xb   : > { %v222_v8 = vsub.s32 (!%p159_p3), %v219_v6, %v221_v7 }
   0xc   : > { %230 = vperm.xlu0 (!%p159_p3), %369, %v227_v2  }
   0xe   : > { %s464_s12 = smov (!%p191_p4, %s384_s12), 1 }
   0xf   : > { %s342_s20 = smul.u32 12, %s464_s12 }
  0x11   : > { %s198_s23 = scalar_lea.vmem %s455_s0, %s342_s20  ;;  %s208_s26 = scalar_lea.vmem %s458_s3, %s342_s20 }
  0x12   : > { %v210_v11 = vld [vmem:[%s198_s23] sm:$0xff]  ;;  %v211_v12 = vld [vmem:[%s198_s23 + $0x8] sm:$0xf] }
  0x87   : > { %v216_v9 = vpop.permute.xlu0 %215 }
  0x88   : > { %v223_v10 = vrot.slane %v216_v9, %v222_v8 }
  0x8a   : > { %v225_v14 = vmul.f32 %v223_v10, %v210_v11  ;;  %v226_v15 = vmul.f32 %v223_v10, %v211_v12 }
  0x8b   : > { %v231_v13 = vpop.permute.xlu0 %230 }
  0x8c   : > { %v238_v16 = vrot.slane %v231_v13, %v222_v8 }
  0x8e   : > { %v240_v17 = vadd.f32 %v238_v16, %v225_v14  ;;  %v241_v18 = vadd.f32 %v238_v16, %v226_v15 }
  0x90   : > { %v242_v19 = vmax.f32 %v240_v17, 0.0  ;;  %v243_v20 = vmax.f32 %v241_v18, 0.0 }
  0x92   : > { %244 = vst [vmem:[%s208_s26] sm:$0xff] %v242_v19  ;;  %245 = vst [vmem:[%s208_s26 + $0x8] sm:$0xf] %v243_v20 }
  0x93 PF: > { %s13_s14 = sadd.s32 1, %s392_s14   ;;  %s459_s12 = smov %s388_s13 }
  0x94   : > { %p10_p5 = scmp.ge.s32.totalorder %s13_s14, 4   ;;  %s460_s13 = smov %s462_s15 }
  0x96   :  { %12 = sbr.rel (!%p10_p5) target bundleno = 2 (0x2), region = 62 }

// kernel: decoder_block.6
= control target key start
LH: loop header
LB: loop body
LE: loop exit
PB: predicated region body
PF: predicated region fallthrough
CT: control target
= control target key end

     0   :  { %s2353_s24 = smov 0   ;;  %s2355_s25 = smov 0   ;;  %s2552_s0 = inlined_call_operand.vmem [shape: f32[2,4,512], index: 0, kind: input, shape index: {}]   ;;  %s2553_s1 = inlined_call_operand.vmem [shape: f32[9,4,4], index: 1, kind: input, shape index: {}]   ;;  %s2554_s2 = inlined_call_operand.vmem [shape: f32[4,1], index: 2, kind: input, shape index: {}]   ;;  %s2555_s3 = inlined_call_operand.vmem [shape: f32[4,1], index: 3, kind: input, shape index: {}]   ;;  %s2556_s4 = inlined_call_operand.vmem [shape: f32[1,512], index: 4, kind: input, shape index: {}]   ;;  %s2557_s5 = inlined_call_operand.vmem [shape: f32[1,384], index: 5, kind: input, shape index: {}]   ;;  %s2558_s6 = inlined_call_operand.vmem [shape: f32[2,4,384], index: 6, kind: output, shape index: {0}]   ;;  %s2559_s7 = inlined_call_operand.vmem [shape: f32[2,1,4,2], index: 7, kind: output, shape index: {1}]  }
   0x1   :  { %s2357_s26 = smov 0  }
   0x2 LB: > { %s30_s27 = sadd.s32 1, %s2295_s25  ;;  %p2083_p0 = scmp.ge.s32.totalorder %s2299_s26, 1  ;;  %s2299_s26 = sphi %s2357_s26, %s18_s26   ;;  %s2295_s25 = sphi %s2355_s25, %s2561_s25   ;;  %s2291_s24 = sphi %s2353_s24, %s2560_s24  }
   0x3   : > { %p32_p1 = scmp.ge.s32.totalorder %s30_s27, 2  ;;  %p266_p2 = scmp.lt.s32.totalorder %s2299_s26, 3 }
   0x5   : > { %s2563_s27 = smov (%p32_p1, %s30_s27), 0  ;;  %p267_p3 = pnand %p2083_p0, %p266_p2 }
   0x6   : > { %v347_v0 = vld [vmem:[%s2554_s2] sm:$0xf] (!%p267_p3)  ;;  %v2301_v1 = vmov (!%p267_p3), 0   ;;  %p313_p4 = scmp.lt.s32.totalorder (!%p267_p3), %s2291_s24, 1  ;;  %v2302_v3 = vmov (!%p267_p3), 839922192   ;;  %v358_v5 = vlaneseq (!%p267_p3) }
   0x7   : > { %270 = sbr.rel (%p267_p3) target bundleno = 699 (0x2bb), region = 44  ;;  %2276 = vset.pattern.permute.xlu0 (!%p267_p3), %v2301_v1  ;;  %v348_v2 = vld [vmem:[%s2555_s3] sm:$0xf] (!%p267_p3)  ;;  %v356_v4 = vunpack.c.l.s4 (!%p267_p3), %v2302_v3  ;;  %v2303_v26 = vmov (!%p267_p3), 0.0   ;;  %vm2304_vm0 = vmmov (!%p267_p3), 0   ;;  %s2305_s15 = smov (!%p267_p3), 127  }
   0x8   : > { %353 = vperm.xlu0 (!%p267_p3), %2276, %v347_v0   ;;  %v2379_v7 = vshrl.u32 (!%p267_p3), %v358_v5, 7  ;;  %v350_v14 = vld [vmem:[%s2556_s4] sm:$0xf] (!%p267_p3)  ;;  %498 = vmatprep.mubr.f32.mxu0 (!%p267_p3), %v2303_v26  ;;  %s2306_s16 = smov (!%p267_p3), 126   ;;  %s2307_s17 = smov (!%p267_p3), 110   ;;  %vm419_vm1 = vcmask (!%p267_p3), 1039360  }
   0x9   : > { %v357_v6 = vunpack.c.0.s8 (!%p267_p3), %v356_v4  ;;  %2162 = vmatprep.subr.mxu1 (!%p267_p3), %v2303_v26  ;;  %2164 = vmatprep.mubr.msk.f32.mxu1 (!%p267_p3), %vm2304_vm0, %v2303_v26  ;;  %s2308_s18 = smov (!%p267_p3), 109   ;;  %s2309_s19 = smov (!%p267_p3), 108   ;;  %vm427_vm2 = vcmask (!%p267_p3), 1043456   ;;  %v2088_v43 = vld [vmem:[%s2553_s1 + $0x4] sm:$0xf] (!%p267_p3)  ;;  %vm423_vm3 = vcmask (!%p267_p3), 31744  }
   0xa   : > { %v384_v9 = vsub.s32 (!%p267_p3), 0, %v2379_v7  ;;  %v388_v10 = vsub.s32 (!%p267_p3), 1, %v2379_v7  ;;  %v392_v11 = vsub.s32 (!%p267_p3), 2, %v2379_v7  ;;  %v396_v12 = vsub.s32 (!%p267_p3), 3, %v2379_v7  ;;  %s2310_s20 = smov (!%p267_p3), 92   ;;  %s2311_s21 = smov (!%p267_p3), 91  }
   0xb   : > { %v360_v8 = vsub.s32 (!%p267_p3), %v357_v6, %v2379_v7  ;;  %s2312_s22 = smov (!%p267_p3), 90   ;;  %vm735_vm4 = vcmask (!%p267_p3), 1031168   ;;  %v404_v50 = vld [vmem:[%s2553_s1] sm:$0xf] (!%p267_p3)  ;;  %vm902_vm5 = vcmask (!%p267_p3), 900096   ;;  %vm1069_vm6 = vcmask (!%p267_p3), 891904  }
   0xc   : > { %367 = vperm.xlu0 (!%p267_p3), %2276, %v348_v2   ;;  %v385_v18 = vrot.slane (!%p267_p3), %v350_v14, %v384_v9  ;;  %v389_v19 = vrot.slane (!%p267_p3), %v350_v14, %v388_v10  ;;  %v393_v20 = vrot.slane (!%p267_p3), %v350_v14, %v392_v11  ;;  %v397_v21 = vrot.slane (!%p267_p3), %v350_v14, %v396_v12  ;;  %v2099_v58 = vld [vmem:[%s2553_s1 + $0x8] sm:$0xf] (!%p267_p3)  ;;  %v2105_v2 = vld [vmem:[%s2553_s1 + $0xc] sm:$0xf] (!%p267_p3)  ;;  %v2111_v14 = vld [vmem:[%s2553_s1 + $0x10] sm:$0xf] (!%p267_p3) }
   0xd   : > { %vm1236_vm7 = vcmask (!%p267_p3), 883712   ;;  %vm1403_vm8 = vcmask (!%p267_p3), 752640   ;;  %vm1570_vm9 = vcmask (!%p267_p3), 744448   ;;  %vm1737_vm10 = vcmask (!%p267_p3), 736256  }
   0xe   : > { %s2565_s24 = smov (!%p313_p4, %s2291_s24), 1  ;;  %v398_v27 = vcombine.low %v385_v18, %v389_v19  ;;  %v399_v28 = vcombine.low %v393_v20, %v397_v21  ;;  %vm1937_vm11 = vcmask 3072   ;;  %vm1939_vm12 = vcmask 11272  }
   0xf   : > { %s2143_s9 = sshll.u32 %s2565_s24, 4  ;;  %s2239_s28 = smul.u32 12, %s2565_s24 }
  0x10   : > { %s317_s12 = scalar_lea.vmem %s2552_s0, %s2143_s9  ;;  %s2087_s9 = sshll.u32 %s2565_s24, 2 }
  0x11   : > { %v345_v16 = vld [vmem:[%s317_s12] sm:$0xff]  ;;  %v346_v17 = vld [vmem:[%s317_s12 + $0x8] sm:$0xff]  ;;  %s331_s8 = scalar_lea.vmem %s2558_s6, %s2239_s28  ;;  %s339_s12 = scalar_lea.vmem %s2559_s7, %s2087_s9 }
  0x87   : > { %v354_v13 = vpop.permute.xlu0 %353 }
  0x88   : > { %v361_v15 = vrot.slane %v354_v13, %v360_v8 }
  0x8a   : > { %v363_v23 = vmul.f32 %v361_v15, %v345_v16  ;;  %v364_v24 = vmul.f32 %v361_v15, %v346_v17 }
  0x8b   : > { %v368_v22 = vpop.permute.xlu0 %367 }
  0x8c   : > { %v375_v25 = vrot.slane %v368_v22, %v360_v8  ;;  %v2117_v22 = vld [vmem:[%s2553_s1 + $0x14] sm:$0xf] }
  0x8e   : > { %v377_v29 = vadd.f32 %v375_v25, %v363_v23  ;;  %v378_v30 = vadd.f32 %v375_v25, %v364_v24 }
  0x90   : > { %v379_v31 = vmax.f32 %v377_v29, 0.0  ;;  %v380_v32 = vmax.f32 %v378_v30, 0.0  ;;  %v2123_v30 = vld [vmem:[%s2553_s1 + $0x18] sm:$0xf] }
  0x92   : > { %v402_v33 = vmul.f32 %v398_v27, %v379_v31  ;;  %v2403_v34 = vmul.f32 %v399_v28, %v380_v32 }
  0x94   : > { %415 = vrot.lane.b32.xlu1 %v2403_v34, %s2305_s15  ;;  %411 = vrot.lane.b32.xlu0 %v402_v33, %s2305_s15  ;;  %v409_v35 = vcombine.high %v402_v33, %v402_v33  ;;  %v410_v36 = vcombine.high %v2403_v34, %v2403_v34 }
  0x98   : > { %729 = vrot.lane.b32.xlu0 %v409_v35, %s2306_s16  ;;  %413 = vrot.lane.b32.xlu1 %v409_v35, %s2305_s15 }
  0x9c   : > { %727 = vrot.lane.b32.xlu0 %v402_v33, %s2306_s16  ;;  %417 = vrot.lane.b32.xlu1 %v410_v36, %s2305_s15 }
  0xa0   : > { %896 = vrot.lane.b32.xlu0 %v409_v35, %s2307_s17  ;;  %731 = vrot.lane.b32.xlu1 %v2403_v34, %s2306_s16 }
  0xa4   : > { %894 = vrot.lane.b32.xlu0 %v402_v33, %s2307_s17  ;;  %733 = vrot.lane.b32.xlu1 %v410_v36, %s2306_s16 }
  0xa8   : > { %1063 = vrot.lane.b32.xlu0 %v409_v35, %s2308_s18  ;;  %898 = vrot.lane.b32.xlu1 %v2403_v34, %s2307_s17 }
  0xac   : > { %1061 = vrot.lane.b32.xlu0 %v402_v33, %s2308_s18  ;;  %900 = vrot.lane.b32.xlu1 %v410_v36, %s2307_s17 }
  0xb0   : > { %1230 = vrot.lane.b32.xlu0 %v409_v35, %s2309_s19  ;;  %1065 = vrot.lane.b32.xlu1 %v2403_v34, %s2308_s18 }
  0xb4   : > { %1228 = vrot.lane.b32.xlu0 %v402_v33, %s2309_s19  ;;  %1067 = vrot.lane.b32.xlu1 %v410_v36, %s2308_s18 }
  0xb8   : > { %1397 = vrot.lane.b32.xlu0 %v409_v35, %s2310_s20  ;;  %1232 = vrot.lane.b32.xlu1 %v2403_v34, %s2309_s19 }
  0xbc   : > { %1395 = vrot.lane.b32.xlu0 %v402_v33, %s2310_s20  ;;  %1234 = vrot.lane.b32.xlu1 %v410_v36, %s2309_s19 }
  0xc0   : > { %1564 = vrot.lane.b32.xlu0 %v409_v35, %s2311_s21  ;;  %1399 = vrot.lane.b32.xlu1 %v2403_v34, %s2310_s20 }
  0xc4   : > { %1562 = vrot.lane.b32.xlu0 %v402_v33, %s2311_s21  ;;  %1401 = vrot.lane.b32.xlu1 %v410_v36, %s2310_s20 }
  0xc8   : > { %1731 = vrot.lane.b32.xlu0 %v409_v35, %s2312_s22  ;;  %1566 = vrot.lane.b32.xlu1 %v2403_v34, %s2311_s21 }
  0xcc   : > { %1729 = vrot.lane.b32.xlu0 %v402_v33, %s2312_s22  ;;  %1568 = vrot.lane.b32.xlu1 %v410_v36, %s2311_s21 }
  0xd0   : > { %1733 = vrot.lane.b32.xlu1 %v2403_v34, %s2312_s22 }
  0xd4   : > { %1735 = vrot.lane.b32.xlu1 %v410_v36, %s2312_s22 }
 0x106   : > { %v416_v37 = vpop.permute.xlu1 %415  ;;  %v412_v38 = vpop.permute.xlu0 %411 }
 0x10a   : > { %v730_v39 = vpop.permute.xlu0 %729  ;;  %v414_v40 = vpop.permute.xlu1 %413 }
 0x10b   : > { %v421_v41 = vsel %vm419_vm1, %v414_v40, %v416_v37  ;;  %v420_v42 = vsel %vm419_vm1, %v412_v38, %v414_v40  ;;  %v2129_v38 = vld [vmem:[%s2553_s1 + $0x1c] sm:$0xf] }
 0x10c   : > { %2089 = vmatprep.subr.msk.mxu0 %vm427_vm2, %v421_v41 }
 0x10d   : > { %2090 = vmatpush1.msk.msra.mxu0 %vm427_vm2, %v420_v42  ;;  %v2135_v42 = vld [vmem:[%s2553_s1 + $0x20] sm:$0xf] }
 0x10e   : > { %v728_v44 = vpop.permute.xlu0 %727  ;;  %2091 = vmatmul.mubr.msk.f32.vlgmr.msra.gmra.mrb[0].mxu0 %vm423_vm3, %v2088_v43  ;;  %2094 = vmatprep.subr.msk.mxu0 %vm427_vm2, %v409_v35  ;;  %v418_v45 = vpop.permute.xlu1 %417 }
 0x10f   : > { %2095 = vmatpush1.msk.msra.mxu0 %vm427_vm2, %v402_v33  ;;  %v422_v46 = vsel %vm419_vm1, %v416_v37, %v418_v45  ;;  %648 = vmatprep.mubr.f32.mxu0 %v2303_v26  ;;  %v736_v51 = vsel %vm735_vm4, %v728_v44, %v730_v39 }
 0x110   : > { %2163 = vmatpush3.msk.msra.mxu1 %vm427_vm2, %v422_v46 }
 0x111   : > { %2165 = vmatmul.mubr.msk.f32.vlgmr.msra.gmra.mrb[0].mxu1 %vm423_vm3, %v2088_v43  ;;  %2167 = vmatprep.subr.mxu1 %v2303_v26  ;;  %v1900_v43 = vld [vmem:[%s2557_s5] sm:$0x7] }
 0x112   : > { %v897_v47 = vpop.permute.xlu0 %896  ;;  %2168 = vmatpush3.msk.msra.mxu1 %vm427_vm2, %v2403_v34  ;;  %v732_v48 = vpop.permute.xlu1 %731  ;;  %2169 = vmatprep.mubr.msk.f32.mxu1 %vm2304_vm0, %v2303_v26  ;;  %v1905_v44 = vrot.slane %v1900_v43, %v384_v9  ;;  %v1909_v45 = vrot.slane %v1900_v43, %v388_v10  ;;  %v1913_v46 = vrot.slane %v1900_v43, %v392_v11 }
 0x113   : > { %v737_v49 = vsel %vm735_vm4, %v730_v39, %v732_v48  ;;  %2172 = vmatprep.subr.mxu1 %v2303_v26 }
 0x114   : > { %2100 = vmatprep.subr.msk.mxu0 %vm427_vm2, %v737_v49 }
 0x116   : > { %v895_v52 = vpop.permute.xlu0 %894  ;;  %2096 = vmatmul.mubr.msk.f32.vlgmr.msra.gmra.mrb[0].mxu0 %vm423_vm3, %v404_v50  ;;  %v734_v53 = vpop.permute.xlu1 %733 }
 0x117   : > { %2101 = vmatpush1.msk.msra.mxu0 %vm427_vm2, %v736_v51  ;;  %v738_v54 = vsel %vm735_vm4, %v732_v48, %v734_v53  ;;  %812 = vmatprep.mubr.f32.mxu0 %v2303_v26  ;;  %v903_v59 = vsel %vm902_vm5, %v895_v52, %v897_v47 }
 0x119   : > { %2170 = vmatmul.mubr.msk.f32.vlgmr.msra.gmra.mrb[0].mxu1 %vm423_vm3, %v404_v50 }
 0x11a   : > { %2173 = vmatpush3.msk.msra.mxu1 %vm427_vm2, %v738_v54  ;;  %v1064_v55 = vpop.permute.xlu0 %1063  ;;  %v899_v56 = vpop.permute.xlu1 %898  ;;  %2174 = vmatprep.mubr.msk.f32.mxu1 %vm2304_vm0, %v2303_v26 }
 0x11b   : > { %v904_v57 = vsel %vm902_vm5, %v897_v47, %v899_v56  ;;  %2177 = vmatprep.subr.mxu1 %v2303_v26 }
 0x11c   : > { %2106 = vmatprep.subr.msk.mxu0 %vm427_vm2, %v904_v57 }
 0x11e   : > { %v1062_v60 = vpop.permute.xlu0 %1061  ;;  %2102 = vmatmul.mubr.msk.f32.vlgmr.msra.gmra.mrb[0].mxu0 %vm423_vm3, %v2099_v58  ;;  %v901_v61 = vpop.permute.xlu1 %900 }
 0x11f   : > { %2107 = vmatpush1.msk.msra.mxu0 %vm427_vm2, %v903_v59  ;;  %v905_v62 = vsel %vm902_vm5, %v899_v56, %v901_v61  ;;  %979 = vmatprep.mubr.f32.mxu0 %v2303_v26  ;;  %v1070_v3 = vsel %vm1069_vm6, %v1062_v60, %v1064_v55 }
 0x121   : > { %2175 = vmatmul.mubr.msk.f32.vlgmr.msra.gmra.mrb[0].mxu1 %vm423_vm3, %v2099_v58 }
 0x122   : > { %2178 = vmatpush3.msk.msra.mxu1 %vm427_vm2, %v905_v62  ;;  %v1231_v63 = vpop.permute.xlu0 %1230  ;;  %v1066_v0 = vpop.permute.xlu1 %1065  ;;  %2179 = vmatprep.mubr.msk.f32.mxu1 %vm2304_vm0, %v2303_v26 }
 0x123   : > { %v1071_v1 = vsel %vm1069_vm6, %v1064_v55, %v1066_v0  ;;  %2182 = vmatprep.subr.mxu1 %v2303_v26 }
 0x124   : > { %2112 = vmatprep.subr.msk.mxu0 %vm427_vm2, %v1071_v1 }
 0x126   : > { %v1229_v4 = vpop.permute.xlu0 %1228  ;;  %2108 = vmatmul.mubr.msk.f32.vlgmr.msra.gmra.mrb[0].mxu0 %vm423_vm3, %v2105_v2  ;;  %v1068_v5 = vpop.permute.xlu1 %1067 }
 0x127   : > { %2113 = vmatpush1.msk.msra.mxu0 %vm427_vm2, %v1070_v3  ;;  %v1072_v6 = vsel %vm1069_vm6, %v1066_v0, %v1068_v5  ;;  %1146 = vmatprep.mubr.f32.mxu0 %v2303_v26  ;;  %v1237_v15 = vsel %vm1236_vm7, %v1229_v4, %v1231_v63 }
 0x129   : > { %2180 = vmatmul.mubr.msk.f32.vlgmr.msra.gmra.mrb[0].mxu1 %vm423_vm3, %v2105_v2 }
 0x12a   : > { %2183 = vmatpush3.msk.msra.mxu1 %vm427_vm2, %v1072_v6  ;;  %v1398_v8 = vpop.permute.xlu0 %1397  ;;  %v1233_v12 = vpop.permute.xlu1 %1232  ;;  %2184 = vmatprep.mubr.msk.f32.mxu1 %vm2304_vm0, %v2303_v26 }
 0x12b   : > { %v1238_v13 = vsel %vm1236_vm7, %v1231_v63, %v1233_v12  ;;  %2187 = vmatprep.subr.mxu1 %v2303_v26 }
 0x12c   : > { %2118 = vmatprep.subr.msk.mxu0 %vm427_vm2, %v1238_v13 }
 0x12e   : > { %v1396_v16 = vpop.permute.xlu0 %1395  ;;  %2114 = vmatmul.mubr.msk.f32.vlgmr.msra.gmra.mrb[0].mxu0 %vm423_vm3, %v2111_v14  ;;  %v1235_v17 = vpop.permute.xlu1 %1234 }
 0x12f   : > { %2119 = vmatpush1.msk.msra.mxu0 %vm427_vm2, %v1237_v15  ;;  %v1239_v18 = vsel %vm1236_vm7, %v1233_v12, %v1235_v17  ;;  %1313 = vmatprep.mubr.f32.mxu0 %v2303_v26  ;;  %v1404_v23 = vsel %vm1403_vm8, %v1396_v16, %v1398_v8 }
 0x131   : > { %2185 = vmatmul.mubr.msk.f32.vlgmr.msra.gmra.mrb[0].mxu1 %vm423_vm3, %v2111_v14 }
 0x132   : > { %2188 = vmatpush3.msk.msra.mxu1 %vm427_vm2, %v1239_v18  ;;  %v1565_v19 = vpop.permute.xlu0 %1564  ;;  %v1400_v20 = vpop.permute.xlu1 %1399  ;;  %2189 = vmatprep.mubr.msk.f32.mxu1 %vm2304_vm0, %v2303_v26 }
 0x133   : > { %v1405_v21 = vsel %vm1403_vm8, %v1398_v8, %v1400_v20  ;;  %2192 = vmatprep.subr.mxu1 %v2303_v26 }
 0x134   : > { %2124 = vmatprep.subr.msk.mxu0 %vm427_vm2, %v1405_v21 }
 0x136   : > { %2120 = vmatmul.mubr.msk.f32.vlgmr.msra.gmra.mrb[0].mxu0 %vm423_vm3, %v2117_v22  ;;  %v1402_v24 = vpop.permute.xlu1 %1401  ;;  %v1563_v25 = vpop.permute.xlu0 %1562 }
 0x137   : > { %2125 = vmatpush1.msk.msra.mxu0 %vm427_vm2, %v1404_v23  ;;  %v1406_v27 = vsel %vm1403_vm8, %v1400_v20, %v1402_v24  ;;  %1480 = vmatprep.mubr.f32.mxu0 %v2303_v26  ;;  %v1571_v32 = vsel %vm1570_vm9, %v1563_v25, %v1565_v19 }
 0x139   : > { %2190 = vmatmul.mubr.msk.f32.vlgmr.msra.gmra.mrb[0].mxu1 %vm423_vm3, %v2117_v22 }
 0x13a   : > { %2193 = vmatpush3.msk.msra.mxu1 %vm427_vm2, %v1406_v27  ;;  %v1567_v28 = vpop.permute.xlu1 %1566  ;;  %2194 = vmatprep.mubr.msk.f32.mxu1 %vm2304_vm0, %v2303_v26  ;;  %v1732_v31 = vpop.permute.xlu0 %1731 }
 0x13b   : > { %v1572_v29 = vsel %vm1570_vm9, %v1565_v19, %v1567_v28  ;;  %2197 = vmatprep.subr.mxu1 %v2303_v26 }
 0x13c   : > { %2130 = vmatprep.subr.msk.mxu0 %vm427_vm2, %v1572_v29 }
 0x13e   : > { %2126 = vmatmul.mubr.msk.f32.vlgmr.msra.gmra.mrb[0].mxu0 %vm423_vm3, %v2123_v30  ;;  %v1569_v33 = vpop.permute.xlu1 %1568  ;;  %v1730_v36 = vpop.permute.xlu0 %1729 }
 0x13f   : > { %2131 = vmatpush1.msk.msra.mxu0 %vm427_vm2, %v1571_v32  ;;  %v1573_v34 = vsel %vm1570_vm9, %v1567_v28, %v1569_v33  ;;  %1647 = vmatprep.mubr.f32.mxu0 %v2303_v26  ;;  %v1738_v39 = vsel %vm1737_vm10, %v1730_v36, %v1732_v31 }
 0x141   : > { %2195 = vmatmul.mubr.msk.f32.vlgmr.msra.gmra.mrb[0].mxu1 %vm423_vm3, %v2123_v30 }
 0x142   : > { %2198 = vmatpush3.msk.msra.mxu1 %vm427_vm2, %v1573_v34  ;;  %v1734_v35 = vpop.permute.xlu1 %1733  ;;  %2199 = vmatprep.mubr.msk.f32.mxu1 %vm2304_vm0, %v2303_v26 }
 0x143   : > { %v1739_v37 = vsel %vm1737_vm10, %v1732_v31, %v1734_v35  ;;  %2202 = vmatprep.subr.mxu1 %v2303_v26 }
 0x144   : > { %2136 = vmatprep.subr.msk.mxu0 %vm427_vm2, %v1739_v37 }
 0x146   : > { %2132 = vmatmul.mubr.msk.f32.vlgmr.msra.gmra.mrb[0].mxu0 %vm423_vm3, %v2129_v38  ;;  %v1736_v40 = vpop.permute.xlu1 %1735 }
 0x147   : > { %2137 = vmatpush1.msk.msra.mxu0 %vm427_vm2, %v1738_v39  ;;  %v1740_v41 = vsel %vm1737_vm10, %v1734_v35, %v1736_v40  ;;  %1814 = vmatprep.mubr.f32.mxu0 %v2303_v26 }
 0x149   : > { %2200 = vmatmul.mubr.msk.f32.vlgmr.msra.gmra.mrb[0].mxu1 %vm423_vm3, %v2129_v38 }
 0x14a   : > { %2203 = vmatpush3.msk.msra.mxu1 %vm427_vm2, %v1740_v41  ;;  %2204 = vmatprep.mubr.msk.f32.mxu1 %vm2304_vm0, %v2303_v26 }
 0x14e   : > { %2138 = vmatmul.mubr.msk.f32.vlgmr.msra.gmra.mrb[0].mxu0 %vm423_vm3, %v2135_v42 }
 0x151   : > { %2205 = vmatmul.mubr.msk.f32.vlgmr.msra.gmra.mrb[0].mxu1 %vm423_vm3, %v2135_v42 }
 0x221   : > { %v1816_v26 = vpop.f32.mrb[0].mxu0 }
 0x222   : > { %v1917_v47 = vmul.f32 %v1905_v44, %v1816_v26  ;;  %v1818_v48 = vpop.f32.mrb[1].mxu0 }
 0x223   : > { %v1896_v49 = vcombine.low %v1816_v26, %v1818_v48  ;;  %v1918_v50 = vmul.f32 %v1909_v45, %v1818_v48 }
 0x224   : > { %v1927_v51 = vmul.f32 %v1917_v47, %v1816_v26  ;;  %v1887_v52 = vpop.f32.mrb[0].mxu1  ;;  %v1920_v9 = vsel %vm427_vm2, %v1917_v47, 0.0 }
 0x225   : > { %1898 = vst [vmem:[%s331_s8] sm:$0xff] %v1896_v49  ;;  %v1921_v53 = vsel %vm427_vm2, %v1918_v50, 0.0  ;;  %v1928_v10 = vmul.f32 %v1918_v50, %v1818_v48  ;;  %1899 = vst [vmem:[%s331_s8 + $0x8] sm:$0xf] %v1887_v52  ;;  %v1919_v7 = vmul.f32 %v1913_v46, %v1887_v52  ;;  %v2206_v11 = vpop.f32.mrb[1].mxu1 }
 0x226   : > { %v1922_v54 = vadd.f32 %v1921_v53, %v1920_v9  ;;  %v1930_v55 = vsel %vm427_vm2, %v1927_v51, 0.0 }
 0x227   : > { %v1931_v56 = vsel %vm427_vm2, %v1928_v10, 0.0  ;;  %v1929_v57 = vmul.f32 %v1919_v7, %v1887_v52  ;;  %v1923_v58 = vsel %vm427_vm2, %v1919_v7, 0.0 }
 0x228   : > { %v1924_v59 = vadd.f32 %v1923_v58, %v1922_v54  ;;  %v1932_v60 = vadd.f32 %v1931_v56, %v1930_v55 }
 0x229   : > { %v1933_v61 = vsel %vm427_vm2, %v1929_v57, 0.0 }
 0x22a   : > { %1925 = vadd.xlane.f32.xlu0 %v1924_v59  ;;  %v1934_v62 = vadd.f32 %v1933_v61, %v1932_v60 }
 0x22c   : > { %1935 = vadd.xlane.f32.xlu1 %v1934_v62 }
 0x2b7   : > { %v1926_v63 = vpop.xlane.xlu0 %1925 }
 0x2b8   : > { %1938 = vst.msk [vmem:[%s339_s12] sm:$0xf] %vm1937_vm11, %v1926_v63 }
 0x2b9   : > { %v1936_v0 = vpop.xlane.xlu1 %1935 }
 0x2ba   : > { %1940 = vst.msk [vmem:[%s339_s12] sm:$0xf] %vm1939_vm12, %v1936_v0 }
 0x2bb PF: > { %s18_s26 = sadd.s32 1, %s2299_s26   ;;  %s2560_s24 = smov %s2295_s25 }
 0x2bc   : > { %p15_p5 = scmp.ge.s32.totalorder %s18_s26, 4   ;;  %s2561_s25 = smov %s2563_s27 }
 0x2be   :  { %17 = sbr.rel (!%p15_p5) target bundleno = 2 (0x2), region = 99 }

// kernel: decoder_block.5
= control target key start
LH: loop header
LB: loop body
LE: loop exit
PB: predicated region body
PF: predicated region fallthrough
CT: control target
= control target key end

     0   :  { %s3941_s21 = smov 0   ;;  %s3943_s22 = smov 0   ;;  %s4410_s0 = inlined_call_operand.vmem [shape: f32[2,4,512], index: 0, kind: input, shape index: {}]   ;;  %s4411_s1 = inlined_call_operand.vmem [shape: f32[2,4,512], index: 1, kind: input, shape index: {}]   ;;  %s4412_s2 = inlined_call_operand.vmem [shape: f32[9,4,4], index: 2, kind: input, shape index: {}]   ;;  %s4413_s3 = inlined_call_operand.vmem [shape: f32[9,4,4], index: 3, kind: input, shape index: {}]   ;;  %s4414_s4 = inlined_call_operand.vmem [shape: f32[1,384], index: 4, kind: input, shape index: {}]   ;;  %s4415_s5 = inlined_call_operand.vmem [shape: f32[2,4,384], index: 5, kind: output, shape index: {0}]   ;;  %s4416_s6 = inlined_call_operand.vmem [shape: f32[2,1,4,2], index: 6, kind: output, shape index: {1}]  }
   0x1   :  { %s3945_s23 = smov 0  }
   0x2 LB: > { %s29_s24 = sadd.s32 1, %s3890_s22  ;;  %p3522_p0 = scmp.ge.s32.totalorder %s3894_s23, 1  ;;  %s3894_s23 = sphi %s3945_s23, %s17_s23   ;;  %s3890_s22 = sphi %s3943_s22, %s4418_s22   ;;  %s3886_s21 = sphi %s3941_s21, %s4417_s21  }
   0x3   : > { %p31_p1 = scmp.ge.s32.totalorder %s29_s24, 2  ;;  %p251_p2 = scmp.lt.s32.totalorder %s3894_s23, 3 }
   0x5   : > { %s4420_s24 = smov (%p31_p1, %s29_s24), 0  ;;  %p252_p3 = pnand %p3522_p0, %p251_p2 }
   0x6   : > { %p301_p4 = scmp.lt.s32.totalorder (!%p252_p3), %s3886_s21, 1  ;;  %v3896_v0 = vmov (!%p252_p3), 0.0   ;;  %vm3897_vm0 = vmmov (!%p252_p3), 0   ;;  %s3898_s29 = smov (!%p252_p3), 127   ;;  %vm355_vm1 = vcmask (!%p252_p3), 1039360   ;;  %vm363_vm2 = vcmask (!%p252_p3), 1043456  }
   0x7   : > { %255 = sbr.rel (%p252_p3) target bundleno = 643 (0x283), region = 40  ;;  %3675 = vmatprep.subr.mxu1 (!%p252_p3), %v3896_v0  ;;  %3677 = vmatprep.mubr.msk.f32.mxu1 (!%p252_p3), %vm3897_vm0, %v3896_v0  ;;  %s3899_s30 = smov (!%p252_p3), 126   ;;  %v3529_v13 = vld [vmem:[%s4412_s2 + $0x4] sm:$0xf] (!%p252_p3)  ;;  %vm359_vm3 = vcmask (!%p252_p3), 31744   ;;  %vm671_vm4 = vcmask (!%p252_p3), 1031168  }
   0x8   : > { %434 = vmatprep.mubr.f32.mxu0 (!%p252_p3), %v3896_v0  ;;  %s3900_s7 = smov (!%p252_p3), 110   ;;  %s3901_s8 = smov (!%p252_p3), 109   ;;  %v340_v22 = vld [vmem:[%s4412_s2] sm:$0xf] (!%p252_p3)  ;;  %vm838_vm5 = vcmask (!%p252_p3), 900096   ;;  %vm1005_vm6 = vcmask (!%p252_p3), 891904  }
   0x9   : > { %s3902_s9 = smov (!%p252_p3), 108   ;;  %s3903_s10 = smov (!%p252_p3), 92   ;;  %v3540_v30 = vld [vmem:[%s4412_s2 + $0x8] sm:$0xf] (!%p252_p3)  ;;  %v3546_v38 = vld [vmem:[%s4412_s2 + $0xc] sm:$0xf] (!%p252_p3) }
   0xa   : > { %s3904_s11 = smov (!%p252_p3), 91   ;;  %s3905_s15 = smov (!%p252_p3), 90   ;;  %vm1172_vm7 = vcmask (!%p252_p3), 883712   ;;  %v3552_v46 = vld [vmem:[%s4412_s2 + $0x10] sm:$0xf] (!%p252_p3)  ;;  %vm1339_vm8 = vcmask (!%p252_p3), 752640  }
   0xb   : > { %v3558_v54 = vld [vmem:[%s4412_s2 + $0x14] sm:$0xf] (!%p252_p3)  ;;  %vm1506_vm9 = vcmask (!%p252_p3), 744448   ;;  %v3564_v62 = vld [vmem:[%s4412_s2 + $0x18] sm:$0xf] (!%p252_p3)  ;;  %vm1673_vm10 = vcmask (!%p252_p3), 736256  }
   0xc   : > { %vm3363_vm11 = vcmask (!%p252_p3), 3072   ;;  %vm3365_vm12 = vcmask (!%p252_p3), 11272  }
   0xe   : > { %s4422_s21 = smov (!%p301_p4, %s3886_s21), 1 }
   0xf   : > { %s3637_s25 = sshll.u32 %s4422_s21, 4  ;;  %s3833_s12 = smul.u32 12, %s4422_s21 }
  0x10   : > { %s305_s28 = scalar_lea.vmem %s4410_s0, %s3637_s25  ;;  %s310_s14 = scalar_lea.vmem %s4411_s1, %s3637_s25 }
  0x11   : > { %v3971_v1 = vld [vmem:[%s305_s28] sm:$0xff]  ;;  %v3973_v2 = vld [vmem:[%s305_s28 + $0x8] sm:$0xff]  ;;  %s324_s17 = scalar_lea.vmem %s4415_s5, %s3833_s12  ;;  %s3528_s18 = sshll.u32 %s4422_s21, 2 }
  0x12   : > { %347 = vrot.lane.b32.xlu1 %v3971_v1, %s3898_s29  ;;  %v3979_v3 = vcombine.high %v3971_v1, %v3971_v1  ;;  %v346_v4 = vcombine.high %v3973_v2, %v3973_v2  ;;  %v4039_v5 = vld [vmem:[%s310_s14] sm:$0xff]  ;;  %v4042_v6 = vld [vmem:[%s310_s14 + $0x8] sm:$0xff]  ;;  %s332_s25 = scalar_lea.vmem %s4416_s6, %s3528_s18 }
  0x13   : > { %v4048_v7 = vcombine.high %v4039_v5, %v4039_v5  ;;  %v4054_v8 = vcombine.high %v4042_v6, %v4042_v6 }
  0x14   : > { %349 = vrot.lane.b32.xlu0 %v3979_v3, %s3898_s29 }
  0x16   : > { %353 = vrot.lane.b32.xlu1 %v346_v4, %s3898_s29 }
  0x18   : > { %351 = vrot.lane.b32.xlu0 %v3973_v2, %s3898_s29 }
  0x1a   : > { %667 = vrot.lane.b32.xlu1 %v3973_v2, %s3899_s30 }
  0x1c   : > { %665 = vrot.lane.b32.xlu0 %v3979_v3, %s3899_s30 }
  0x1e   : > { %669 = vrot.lane.b32.xlu1 %v346_v4, %s3899_s30 }
  0x20   : > { %663 = vrot.lane.b32.xlu0 %v3971_v1, %s3899_s30 }
  0x22   : > { %834 = vrot.lane.b32.xlu1 %v3973_v2, %s3900_s7 }
  0x24   : > { %832 = vrot.lane.b32.xlu0 %v3979_v3, %s3900_s7 }
  0x26   : > { %836 = vrot.lane.b32.xlu1 %v346_v4, %s3900_s7 }
  0x28   : > { %830 = vrot.lane.b32.xlu0 %v3971_v1, %s3900_s7 }
  0x2a   : > { %1001 = vrot.lane.b32.xlu1 %v3973_v2, %s3901_s8 }
  0x2c   : > { %999 = vrot.lane.b32.xlu0 %v3979_v3, %s3901_s8 }
  0x2e   : > { %1003 = vrot.lane.b32.xlu1 %v346_v4, %s3901_s8 }
  0x30   : > { %997 = vrot.lane.b32.xlu0 %v3971_v1, %s3901_s8 }
  0x32   : > { %1168 = vrot.lane.b32.xlu1 %v3973_v2, %s3902_s9 }
  0x34   : > { %1166 = vrot.lane.b32.xlu0 %v3979_v3, %s3902_s9 }
  0x36   : > { %1170 = vrot.lane.b32.xlu1 %v346_v4, %s3902_s9 }
  0x38   : > { %1164 = vrot.lane.b32.xlu0 %v3971_v1, %s3902_s9 }
  0x3a   : > { %1335 = vrot.lane.b32.xlu1 %v3973_v2, %s3903_s10 }
  0x3c   : > { %1333 = vrot.lane.b32.xlu0 %v3979_v3, %s3903_s10 }
  0x3e   : > { %1337 = vrot.lane.b32.xlu1 %v346_v4, %s3903_s10 }
  0x40   : > { %1331 = vrot.lane.b32.xlu0 %v3971_v1, %s3903_s10 }
  0x42   : > { %1502 = vrot.lane.b32.xlu1 %v3973_v2, %s3904_s11 }
  0x44   : > { %1500 = vrot.lane.b32.xlu0 %v3979_v3, %s3904_s11 }
  0x46   : > { %1504 = vrot.lane.b32.xlu1 %v346_v4, %s3904_s11 }
  0x48   : > { %1498 = vrot.lane.b32.xlu0 %v3971_v1, %s3904_s11 }
  0x4a   : > { %1669 = vrot.lane.b32.xlu1 %v3973_v2, %s3905_s15 }
  0x4c   : > { %1667 = vrot.lane.b32.xlu0 %v3979_v3, %s3905_s15 }
  0x4e   : > { %1671 = vrot.lane.b32.xlu1 %v346_v4, %s3905_s15 }
  0x50   : > { %1665 = vrot.lane.b32.xlu0 %v3971_v1, %s3905_s15 }
  0x52   : > { %1998 = vrot.lane.b32.xlu1 %v4042_v6, %s3898_s29 }
  0x54   : > { %1996 = vrot.lane.b32.xlu0 %v4048_v7, %s3898_s29 }
  0x56   : > { %2000 = vrot.lane.b32.xlu1 %v4054_v8, %s3898_s29 }
  0x58   : > { %1994 = vrot.lane.b32.xlu0 %v4039_v5, %s3898_s29 }
  0x5a   : > { %2164 = vrot.lane.b32.xlu1 %v4042_v6, %s3899_s30 }
  0x5c   : > { %2162 = vrot.lane.b32.xlu0 %v4048_v7, %s3899_s30 }
  0x5e   : > { %2166 = vrot.lane.b32.xlu1 %v4054_v8, %s3899_s30 }
  0x60   : > { %2160 = vrot.lane.b32.xlu0 %v4039_v5, %s3899_s30 }
  0x62   : > { %2330 = vrot.lane.b32.xlu1 %v4042_v6, %s3900_s7 }
  0x64   : > { %2328 = vrot.lane.b32.xlu0 %v4048_v7, %s3900_s7 }
  0x66   : > { %2332 = vrot.lane.b32.xlu1 %v4054_v8, %s3900_s7 }
  0x68   : > { %2326 = vrot.lane.b32.xlu0 %v4039_v5, %s3900_s7 }
  0x6a   : > { %2496 = vrot.lane.b32.xlu1 %v4042_v6, %s3901_s8 }
  0x6c   : > { %2494 = vrot.lane.b32.xlu0 %v4048_v7, %s3901_s8 }
  0x6e   : > { %2498 = vrot.lane.b32.xlu1 %v4054_v8, %s3901_s8 }
  0x70   : > { %2492 = vrot.lane.b32.xlu0 %v4039_v5, %s3901_s8 }
  0x72   : > { %2662 = vrot.lane.b32.xlu1 %v4042_v6, %s3902_s9 }
  0x74   : > { %2660 = vrot.lane.b32.xlu0 %v4048_v7, %s3902_s9 }
  0x76   : > { %2664 = vrot.lane.b32.xlu1 %v4054_v8, %s3902_s9 }
  0x78   : > { %2658 = vrot.lane.b32.xlu0 %v4039_v5, %s3902_s9 }
  0x7a   : > { %2828 = vrot.lane.b32.xlu1 %v4042_v6, %s3903_s10 }
  0x7c   : > { %2826 = vrot.lane.b32.xlu0 %v4048_v7, %s3903_s10 }
  0x7e   : > { %2830 = vrot.lane.b32.xlu1 %v4054_v8, %s3903_s10 }
  0x80   : > { %2824 = vrot.lane.b32.xlu0 %v4039_v5, %s3903_s10 }
  0x82   : > { %2994 = vrot.lane.b32.xlu1 %v4042_v6, %s3904_s11 }
  0x84   : > { %v348_v9 = vpop.permute.xlu1 %347  ;;  %2992 = vrot.lane.b32.xlu0 %v4048_v7, %s3904_s11 }
  0x86   : > { %v350_v10 = vpop.permute.xlu0 %349  ;;  %2996 = vrot.lane.b32.xlu1 %v4054_v8, %s3904_s11 }
  0x87   : > { %v356_v16 = vsel %vm355_vm1, %v348_v9, %v350_v10 }
  0x88   : > { %v354_v11 = vpop.permute.xlu1 %353  ;;  %2990 = vrot.lane.b32.xlu0 %v4039_v5, %s3904_s11 }
  0x8a   : > { %v352_v12 = vpop.permute.xlu0 %351  ;;  %3160 = vrot.lane.b32.xlu1 %v4042_v6, %s3905_s15 }
  0x8b   : > { %v357_v14 = vsel %vm355_vm1, %v350_v10, %v352_v12  ;;  %v358_v15 = vsel %vm355_vm1, %v352_v12, %v354_v11  ;;  %v3570_v10 = vld [vmem:[%s4412_s2 + $0x1c] sm:$0xf] }
  0x8c   : > { %3530 = vmatprep.subr.msk.mxu0 %vm363_vm2, %v357_v14  ;;  %3676 = vmatpush3.msk.msra.mxu1 %vm363_vm2, %v358_v15  ;;  %v668_v17 = vpop.permute.xlu1 %667 }
  0x8d   : > { %3531 = vmatpush1.msk.msra.mxu0 %vm363_vm2, %v356_v16  ;;  %3678 = vmatmul.mubr.msk.f32.vlgmr.msra.gmra.mrb[0].mxu1 %vm359_vm3, %v3529_v13  ;;  %v3576_v16 = vld [vmem:[%s4412_s2 + $0x20] sm:$0xf] }
  0x8e   : > { %3532 = vmatmul.mubr.msk.f32.vlgmr.msra.gmra.mrb[0].mxu0 %vm359_vm3, %v3529_v13  ;;  %3535 = vmatprep.subr.msk.mxu0 %vm363_vm2, %v3979_v3  ;;  %v666_v18 = vpop.permute.xlu0 %665 }
  0x8f   : > { %3536 = vmatpush1.msk.msra.mxu0 %vm363_vm2, %v3971_v1  ;;  %v673_v19 = vsel %vm671_vm4, %v666_v18, %v668_v17  ;;  %3680 = vmatprep.subr.mxu1 %v3896_v0 }
  0x90   : > { %3681 = vmatpush3.msk.msra.mxu1 %vm363_vm2, %v3973_v2  ;;  %3158 = vrot.lane.b32.xlu0 %v4048_v7, %s3905_s15  ;;  %v670_v20 = vpop.permute.xlu1 %669 }
  0x91   : > { %3541 = vmatprep.subr.msk.mxu0 %vm363_vm2, %v673_v19  ;;  %3682 = vmatprep.mubr.msk.f32.mxu1 %vm3897_vm0, %v3896_v0  ;;  %v674_v23 = vsel %vm671_vm4, %v668_v17, %v670_v20 }
  0x92   : > { %v664_v21 = vpop.permute.xlu0 %663  ;;  %584 = vmatprep.mubr.f32.mxu0 %v3896_v0  ;;  %3685 = vmatprep.subr.mxu1 %v3896_v0 }
  0x93   : > { %3162 = vrot.lane.b32.xlu1 %v4054_v8, %s3905_s15  ;;  %v672_v24 = vsel %vm671_vm4, %v664_v21, %v666_v18  ;;  %v1834_v21 = vld [vmem:[%s4413_s3] sm:$0xf] }
  0x94   : > { %3156 = vrot.lane.b32.xlu0 %v4039_v5, %s3905_s15  ;;  %v835_v25 = vpop.permute.xlu1 %834 }
  0x95   : > { %3683 = vmatmul.mubr.msk.f32.vlgmr.msra.gmra.mrb[0].mxu1 %vm359_vm3, %v340_v22 }
  0x96   : > { %3537 = vmatmul.mubr.msk.f32.vlgmr.msra.gmra.mrb[0].mxu0 %vm359_vm3, %v340_v22  ;;  %3686 = vmatpush3.msk.msra.mxu1 %vm363_vm2, %v674_v23  ;;  %v833_v26 = vpop.permute.xlu0 %832 }
  0x97   : > { %3542 = vmatpush1.msk.msra.mxu0 %vm363_vm2, %v672_v24  ;;  %v840_v27 = vsel %vm838_vm5, %v833_v26, %v835_v25  ;;  %3687 = vmatprep.mubr.msk.f32.mxu1 %vm3897_vm0, %v3896_v0 }
  0x98   : > { %3547 = vmatprep.subr.msk.mxu0 %vm363_vm2, %v840_v27  ;;  %v837_v28 = vpop.permute.xlu1 %836  ;;  %748 = vmatprep.mubr.f32.mxu0 %v3896_v0  ;;  %v3587_v27 = vld [vmem:[%s4413_s3 + $0x4] sm:$0xf] }
  0x99   : > { %3690 = vmatprep.subr.mxu1 %v3896_v0  ;;  %v841_v31 = vsel %vm838_vm5, %v835_v25, %v837_v28 }
  0x9a   : > { %v831_v29 = vpop.permute.xlu0 %830 }
  0x9b   : > { %v839_v32 = vsel %vm838_vm5, %v831_v29, %v833_v26 }
  0x9c   : > { %v1002_v33 = vpop.permute.xlu1 %1001 }
  0x9d   : > { %3688 = vmatmul.mubr.msk.f32.vlgmr.msra.gmra.mrb[0].mxu1 %vm359_vm3, %v3540_v30 }
  0x9e   : > { %3543 = vmatmul.mubr.msk.f32.vlgmr.msra.gmra.mrb[0].mxu0 %vm359_vm3, %v3540_v30  ;;  %3691 = vmatpush3.msk.msra.mxu1 %vm363_vm2, %v841_v31  ;;  %v1000_v34 = vpop.permute.xlu0 %999 }
  0x9f   : > { %3548 = vmatpush1.msk.msra.mxu0 %vm363_vm2, %v839_v32  ;;  %v1007_v35 = vsel %vm1005_vm6, %v1000_v34, %v1002_v33  ;;  %3692 = vmatprep.mubr.msk.f32.mxu1 %vm3897_vm0, %v3896_v0 }
  0xa0   : > { %3553 = vmatprep.subr.msk.mxu0 %vm363_vm2, %v1007_v35  ;;  %v1004_v36 = vpop.permute.xlu1 %1003  ;;  %915 = vmatprep.mubr.f32.mxu0 %v3896_v0  ;;  %v3593_v35 = vld [vmem:[%s4413_s3 + $0x8] sm:$0xf] }
  0xa1   : > { %3695 = vmatprep.subr.mxu1 %v3896_v0  ;;  %v1008_v39 = vsel %vm1005_vm6, %v1002_v33, %v1004_v36 }
  0xa2   : > { %v998_v37 = vpop.permute.xlu0 %997 }
  0xa3   : > { %v1006_v40 = vsel %vm1005_vm6, %v998_v37, %v1000_v34 }
  0xa4   : > { %v1169_v41 = vpop.permute.xlu1 %1168 }
  0xa5   : > { %3693 = vmatmul.mubr.msk.f32.vlgmr.msra.gmra.mrb[0].mxu1 %vm359_vm3, %v3546_v38 }
  0xa6   : > { %3549 = vmatmul.mubr.msk.f32.vlgmr.msra.gmra.mrb[0].mxu0 %vm359_vm3, %v3546_v38  ;;  %3696 = vmatpush3.msk.msra.mxu1 %vm363_vm2, %v1008_v39  ;;  %v1167_v42 = vpop.permute.xlu0 %1166 }
  0xa7   : > { %3554 = vmatpush1.msk.msra.mxu0 %vm363_vm2, %v1006_v40  ;;  %v1174_v43 = vsel %vm1172_vm7, %v1167_v42, %v1169_v41  ;;  %3697 = vmatprep.mubr.msk.f32.mxu1 %vm3897_vm0, %v3896_v0 }
  0xa8   : > { %3559 = vmatprep.subr.msk.mxu0 %vm363_vm2, %v1174_v43  ;;  %v1171_v44 = vpop.permute.xlu1 %1170  ;;  %1082 = vmatprep.mubr.f32.mxu0 %v3896_v0  ;;  %v3599_v43 = vld [vmem:[%s4413_s3 + $0xc] sm:$0xf] }
  0xa9   : > { %3700 = vmatprep.subr.mxu1 %v3896_v0  ;;  %v1175_v47 = vsel %vm1172_vm7, %v1169_v41, %v1171_v44 }
  0xaa   : > { %v1165_v45 = vpop.permute.xlu0 %1164 }
  0xab   : > { %v1173_v48 = vsel %vm1172_vm7, %v1165_v45, %v1167_v42 }
  0xac   : > { %v1336_v49 = vpop.permute.xlu1 %1335 }
  0xad   : > { %3698 = vmatmul.mubr.msk.f32.vlgmr.msra.gmra.mrb[0].mxu1 %vm359_vm3, %v3552_v46 }
  0xae   : > { %3555 = vmatmul.mubr.msk.f32.vlgmr.msra.gmra.mrb[0].mxu0 %vm359_vm3, %v3552_v46  ;;  %3701 = vmatpush3.msk.msra.mxu1 %vm363_vm2, %v1175_v47  ;;  %v1334_v50 = vpop.permute.xlu0 %1333 }
  0xaf   : > { %3560 = vmatpush1.msk.msra.mxu0 %vm363_vm2, %v1173_v48  ;;  %v1341_v51 = vsel %vm1339_vm8, %v1334_v50, %v1336_v49  ;;  %3702 = vmatprep.mubr.msk.f32.mxu1 %vm3897_vm0, %v3896_v0 }
  0xb0   : > { %3565 = vmatprep.subr.msk.mxu0 %vm363_vm2, %v1341_v51  ;;  %v1338_v52 = vpop.permute.xlu1 %1337  ;;  %1249 = vmatprep.mubr.f32.mxu0 %v3896_v0  ;;  %v3605_v51 = vld [vmem:[%s4413_s3 + $0x10] sm:$0xf] }
  0xb1   : > { %3705 = vmatprep.subr.mxu1 %v3896_v0  ;;  %v1342_v55 = vsel %vm1339_vm8, %v1336_v49, %v1338_v52 }
  0xb2   : > { %v1332_v53 = vpop.permute.xlu0 %1331 }
  0xb3   : > { %v1340_v56 = vsel %vm1339_vm8, %v1332_v53, %v1334_v50 }
  0xb4   : > { %v1503_v57 = vpop.permute.xlu1 %1502 }
  0xb5   : > { %3703 = vmatmul.mubr.msk.f32.vlgmr.msra.gmra.mrb[0].mxu1 %vm359_vm3, %v3558_v54 }
  0xb6   : > { %3561 = vmatmul.mubr.msk.f32.vlgmr.msra.gmra.mrb[0].mxu0 %vm359_vm3, %v3558_v54  ;;  %3706 = vmatpush3.msk.msra.mxu1 %vm363_vm2, %v1342_v55  ;;  %v1501_v58 = vpop.permute.xlu0 %1500 }
  0xb7   : > { %3566 = vmatpush1.msk.msra.mxu0 %vm363_vm2, %v1340_v56  ;;  %v1508_v59 = vsel %vm1506_vm9, %v1501_v58, %v1503_v57  ;;  %3707 = vmatprep.mubr.msk.f32.mxu1 %vm3897_vm0, %v3896_v0 }
  0xb8   : > { %3571 = vmatprep.subr.msk.mxu0 %vm363_vm2, %v1508_v59  ;;  %v1505_v60 = vpop.permute.xlu1 %1504  ;;  %1416 = vmatprep.mubr.f32.mxu0 %v3896_v0 }
  0xb9   : > { %3710 = vmatprep.subr.mxu1 %v3896_v0  ;;  %v1509_v63 = vsel %vm1506_vm9, %v1503_v57, %v1505_v60 }
  0xba   : > { %v1499_v61 = vpop.permute.xlu0 %1498 }
  0xbb   : > { %v1507_v1 = vsel %vm1506_vm9, %v1499_v61, %v1501_v58  ;;  %v3611_v58 = vld [vmem:[%s4413_s3 + $0x14] sm:$0xf] }
  0xbc   : > { %v1670_v2 = vpop.permute.xlu1 %1669 }
  0xbd   : > { %3708 = vmatmul.mubr.msk.f32.vlgmr.msra.gmra.mrb[0].mxu1 %vm359_vm3, %v3564_v62 }
  0xbe   : > { %3567 = vmatmul.mubr.msk.f32.vlgmr.msra.gmra.mrb[0].mxu0 %vm359_vm3, %v3564_v62  ;;  %3711 = vmatpush3.msk.msra.mxu1 %vm363_vm2, %v1509_v63  ;;  %v1668_v3 = vpop.permute.xlu0 %1667 }
  0xbf   : > { %3572 = vmatpush1.msk.msra.mxu0 %vm363_vm2, %v1507_v1  ;;  %v1675_v4 = vsel %vm1673_vm10, %v1668_v3, %v1670_v2  ;;  %3712 = vmatprep.mubr.msk.f32.mxu1 %vm3897_vm0, %v3896_v0  ;;  %v3617_v1 = vld [vmem:[%s4413_s3 + $0x18] sm:$0xf] }
  0xc0   : > { %3577 = vmatprep.subr.msk.mxu0 %vm363_vm2, %v1675_v4  ;;  %v1672_v8 = vpop.permute.xlu1 %1671  ;;  %1583 = vmatprep.mubr.f32.mxu0 %v3896_v0 }
  0xc1   : > { %3715 = vmatprep.subr.mxu1 %v3896_v0  ;;  %v1676_v11 = vsel %vm1673_vm10, %v1670_v2, %v1672_v8 }
  0xc2   : > { %v1666_v9 = vpop.permute.xlu0 %1665 }
  0xc3   : > { %v1674_v12 = vsel %vm1673_vm10, %v1666_v9, %v1668_v3 }
  0xc4   : > { %v1999_v13 = vpop.permute.xlu1 %1998 }
  0xc5   : > { %3713 = vmatmul.mubr.msk.f32.vlgmr.msra.gmra.mrb[0].mxu1 %vm359_vm3, %v3570_v10 }
  0xc6   : > { %3573 = vmatmul.mubr.msk.f32.vlgmr.msra.gmra.mrb[0].mxu0 %vm359_vm3, %v3570_v10  ;;  %3716 = vmatpush3.msk.msra.mxu1 %vm363_vm2, %v1676_v11  ;;  %v1997_v14 = vpop.permute.xlu0 %1996 }
  0xc7   : > { %3578 = vmatpush1.msk.msra.mxu0 %vm363_vm2, %v1674_v12  ;;  %3717 = vmatprep.mubr.msk.f32.mxu1 %vm3897_vm0, %v3896_v0  ;;  %v2003_v19 = vsel %vm355_vm1, %v1997_v14, %v1999_v13  ;;  %v3623_v12 = vld [vmem:[%s4413_s3 + $0x1c] sm:$0xf] }
  0xc8   : > { %1750 = vmatprep.mubr.f32.mxu0 %v3896_v0  ;;  %3582 = vmatprep.subr.msk.mxu0 %vm363_vm2, %v4048_v7  ;;  %v2001_v15 = vpop.permute.xlu1 %2000 }
  0xc9   : > { %3720 = vmatprep.subr.mxu1 %v3896_v0 }
  0xca   : > { %v1995_v17 = vpop.permute.xlu0 %1994 }
  0xcb   : > { %v2002_v23 = vsel %vm355_vm1, %v1995_v17, %v1997_v14 }
  0xcc   : > { %v2165_v18 = vpop.permute.xlu1 %2164 }
  0xcd   : > { %3718 = vmatmul.mubr.msk.f32.vlgmr.msra.gmra.mrb[0].mxu1 %vm359_vm3, %v3576_v16 }
  0xce   : > { %3579 = vmatmul.mubr.msk.f32.vlgmr.msra.gmra.mrb[0].mxu0 %vm359_vm3, %v3576_v16  ;;  %3721 = vmatpush3.msk.msra.mxu1 %vm363_vm2, %v4042_v6  ;;  %v2163_v20 = vpop.permute.xlu0 %2162  ;;  %v2004_v6 = vsel %vm355_vm1, %v1999_v13, %v2001_v15  ;;  %v3629_v15 = vld [vmem:[%s4413_s3 + $0x20] sm:$0xf]  ;;  %v3328_v16 = vlaneseq }
  0xcf   : > { %3583 = vmatpush1.msk.msra.mxu0 %vm363_vm2, %v4039_v5  ;;  %3722 = vmatprep.mubr.msk.f32.mxu1 %vm3897_vm0, %v3896_v0  ;;  %v2169_v24 = vsel %vm671_vm4, %v2163_v20, %v2165_v18 }
  0xd0   : > { %3588 = vmatprep.subr.msk.mxu0 %vm363_vm2, %v2003_v19  ;;  %1911 = vmatprep.mubr.f32.mxu0 %v3896_v0  ;;  %v2167_v7 = vpop.permute.xlu1 %2166  ;;  %v3329_v17 = vshrl.u32 %v3328_v16, 7  ;;  %v3326_v19 = vld [vmem:[%s4414_s4] sm:$0x7] }
  0xd1   : > { %3725 = vmatprep.subr.mxu1 %v3896_v0  ;;  %v2170_v29 = vsel %vm671_vm4, %v2165_v18, %v2167_v7 }
  0xd2   : > { %v2161_v22 = vpop.permute.xlu0 %2160  ;;  %v3338_v18 = vsub.s32 2, %v3329_v17  ;;  %v3334_v7 = vsub.s32 1, %v3329_v17 }
  0xd3   : > { %v2168_v30 = vsel %vm671_vm4, %v2161_v22, %v2163_v20  ;;  %v3330_v20 = vsub.s32 0, %v3329_v17 }
  0xd4   : > { %v2331_v5 = vpop.permute.xlu1 %2330  ;;  %v3335_v22 = vrot.slane %v3326_v19, %v3334_v7 }
  0xd5   : > { %3723 = vmatmul.mubr.msk.f32.vlgmr.msra.gmra.mrb[0].mxu1 %vm359_vm3, %v1834_v21 }
  0xd6   : > { %3584 = vmatmul.mubr.msk.f32.vlgmr.msra.gmra.mrb[0].mxu0 %vm359_vm3, %v1834_v21  ;;  %3726 = vmatpush3.msk.msra.mxu1 %vm363_vm2, %v2004_v6  ;;  %v2329_v25 = vpop.permute.xlu0 %2328  ;;  %v3339_v21 = vrot.slane %v3326_v19, %v3338_v18 }
  0xd7   : > { %3589 = vmatpush1.msk.msra.mxu0 %vm363_vm2, %v2002_v23  ;;  %3727 = vmatprep.mubr.msk.f32.mxu1 %vm3897_vm0, %v3896_v0  ;;  %v2335_v32 = vsel %vm838_vm5, %v2329_v25, %v2331_v5 }
  0xd8   : > { %3594 = vmatprep.subr.msk.mxu0 %vm363_vm2, %v2169_v24  ;;  %2078 = vmatprep.mubr.f32.mxu0 %v3896_v0  ;;  %v2333_v26 = vpop.permute.xlu1 %2332 }
  0xd9   : > { %3730 = vmatprep.subr.mxu1 %v3896_v0  ;;  %v2336_v37 = vsel %vm838_vm5, %v2331_v5, %v2333_v26 }
  0xda   : > { %v2327_v28 = vpop.permute.xlu0 %2326 }
  0xdb   : > { %v2334_v38 = vsel %vm838_vm5, %v2327_v28, %v2329_v25 }
  0xdc   : > { %v2497_v31 = vpop.permute.xlu1 %2496 }
  0xdd   : > { %3728 = vmatmul.mubr.msk.f32.vlgmr.msra.gmra.mrb[0].mxu1 %vm359_vm3, %v3587_v27 }
  0xde   : > { %3590 = vmatmul.mubr.msk.f32.vlgmr.msra.gmra.mrb[0].mxu0 %vm359_vm3, %v3587_v27  ;;  %3731 = vmatpush3.msk.msra.mxu1 %vm363_vm2, %v2170_v29  ;;  %v2495_v33 = vpop.permute.xlu0 %2494 }
  0xdf   : > { %3595 = vmatpush1.msk.msra.mxu0 %vm363_vm2, %v2168_v30  ;;  %3732 = vmatprep.mubr.msk.f32.mxu1 %vm3897_vm0, %v3896_v0  ;;  %v2501_v40 = vsel %vm1005_vm6, %v2495_v33, %v2497_v31 }
  0xe0   : > { %3600 = vmatprep.subr.msk.mxu0 %vm363_vm2, %v2335_v32  ;;  %2244 = vmatprep.mubr.f32.mxu0 %v3896_v0  ;;  %v2499_v34 = vpop.permute.xlu1 %2498 }
  0xe1   : > { %3735 = vmatprep.subr.mxu1 %v3896_v0  ;;  %v2502_v45 = vsel %vm1005_vm6, %v2497_v31, %v2499_v34 }
  0xe2   : > { %v2493_v36 = vpop.permute.xlu0 %2492 }
  0xe3   : > { %v2500_v46 = vsel %vm1005_vm6, %v2493_v36, %v2495_v33 }
  0xe4   : > { %v2663_v39 = vpop.permute.xlu1 %2662 }
  0xe5   : > { %3733 = vmatmul.mubr.msk.f32.vlgmr.msra.gmra.mrb[0].mxu1 %vm359_vm3, %v3593_v35 }
  0xe6   : > { %3596 = vmatmul.mubr.msk.f32.vlgmr.msra.gmra.mrb[0].mxu0 %vm359_vm3, %v3593_v35  ;;  %3736 = vmatpush3.msk.msra.mxu1 %vm363_vm2, %v2336_v37  ;;  %v2661_v41 = vpop.permute.xlu0 %2660 }
  0xe7   : > { %3601 = vmatpush1.msk.msra.mxu0 %vm363_vm2, %v2334_v38  ;;  %3737 = vmatprep.mubr.msk.f32.mxu1 %vm3897_vm0, %v3896_v0  ;;  %v2667_v48 = vsel %vm1172_vm7, %v2661_v41, %v2663_v39 }
  0xe8   : > { %3606 = vmatprep.subr.msk.mxu0 %vm363_vm2, %v2501_v40  ;;  %2410 = vmatprep.mubr.f32.mxu0 %v3896_v0  ;;  %v2665_v42 = vpop.permute.xlu1 %2664 }
  0xe9   : > { %3740 = vmatprep.subr.mxu1 %v3896_v0  ;;  %v2668_v53 = vsel %vm1172_vm7, %v2663_v39, %v2665_v42 }
  0xea   : > { %v2659_v44 = vpop.permute.xlu0 %2658 }
  0xeb   : > { %v2666_v54 = vsel %vm1172_vm7, %v2659_v44, %v2661_v41 }
  0xec   : > { %v2829_v47 = vpop.permute.xlu1 %2828 }
  0xed   : > { %3738 = vmatmul.mubr.msk.f32.vlgmr.msra.gmra.mrb[0].mxu1 %vm359_vm3, %v3599_v43 }
  0xee   : > { %3602 = vmatmul.mubr.msk.f32.vlgmr.msra.gmra.mrb[0].mxu0 %vm359_vm3, %v3599_v43  ;;  %3741 = vmatpush3.msk.msra.mxu1 %vm363_vm2, %v2502_v45  ;;  %v2827_v49 = vpop.permute.xlu0 %2826 }
  0xef   : > { %3607 = vmatpush1.msk.msra.mxu0 %vm363_vm2, %v2500_v46  ;;  %3742 = vmatprep.mubr.msk.f32.mxu1 %vm3897_vm0, %v3896_v0  ;;  %v2833_v55 = vsel %vm1339_vm8, %v2827_v49, %v2829_v47 }
  0xf0   : > { %3612 = vmatprep.subr.msk.mxu0 %vm363_vm2, %v2667_v48  ;;  %2576 = vmatprep.mubr.f32.mxu0 %v3896_v0  ;;  %v2831_v50 = vpop.permute.xlu1 %2830 }
  0xf1   : > { %3745 = vmatprep.subr.mxu1 %v3896_v0  ;;  %v2834_v59 = vsel %vm1339_vm8, %v2829_v47, %v2831_v50 }
  0xf2   : > { %v2825_v52 = vpop.permute.xlu0 %2824 }
  0xf3   : > { %v2832_v60 = vsel %vm1339_vm8, %v2825_v52, %v2827_v49 }
  0xf4   : > { %v2995_v56 = vpop.permute.xlu1 %2994 }
  0xf5   : > { %3743 = vmatmul.mubr.msk.f32.vlgmr.msra.gmra.mrb[0].mxu1 %vm359_vm3, %v3605_v51 }
  0xf6   : > { %3608 = vmatmul.mubr.msk.f32.vlgmr.msra.gmra.mrb[0].mxu0 %vm359_vm3, %v3605_v51  ;;  %3746 = vmatpush3.msk.msra.mxu1 %vm363_vm2, %v2668_v53  ;;  %v2993_v57 = vpop.permute.xlu0 %2992 }
  0xf7   : > { %3613 = vmatpush1.msk.msra.mxu0 %vm363_vm2, %v2666_v54  ;;  %3747 = vmatprep.mubr.msk.f32.mxu1 %vm3897_vm0, %v3896_v0  ;;  %v2999_v62 = vsel %vm1506_vm9, %v2993_v57, %v2995_v56 }
  0xf8   : > { %3618 = vmatprep.subr.msk.mxu0 %vm363_vm2, %v2833_v55  ;;  %2742 = vmatprep.mubr.f32.mxu0 %v3896_v0  ;;  %v2997_v61 = vpop.permute.xlu1 %2996 }
  0xf9   : > { %3750 = vmatprep.subr.mxu1 %v3896_v0  ;;  %v3000_v3 = vsel %vm1506_vm9, %v2995_v56, %v2997_v61 }
  0xfa   : > { %v2991_v63 = vpop.permute.xlu0 %2990 }
  0xfb   : > { %v2998_v8 = vsel %vm1506_vm9, %v2991_v63, %v2993_v57 }
  0xfc   : > { %v3161_v2 = vpop.permute.xlu1 %3160 }
  0xfd   : > { %3748 = vmatmul.mubr.msk.f32.vlgmr.msra.gmra.mrb[0].mxu1 %vm359_vm3, %v3611_v58 }
  0xfe   : > { %3614 = vmatmul.mubr.msk.f32.vlgmr.msra.gmra.mrb[0].mxu0 %vm359_vm3, %v3611_v58  ;;  %3751 = vmatpush3.msk.msra.mxu1 %vm363_vm2, %v2834_v59 }
  0xff   : > { %3619 = vmatpush1.msk.msra.mxu0 %vm363_vm2, %v2832_v60  ;;  %3752 = vmatprep.mubr.msk.f32.mxu1 %vm3897_vm0, %v3896_v0 }
 0x100   : > { %3624 = vmatprep.subr.msk.mxu0 %vm363_vm2, %v2999_v62  ;;  %2908 = vmatprep.mubr.f32.mxu0 %v3896_v0 }
 0x101   : > { %3755 = vmatprep.subr.mxu1 %v3896_v0 }
 0x102   : > { %v3159_v4 = vpop.permute.xlu0 %3158 }
 0x103   : > { %v3165_v9 = vsel %vm1673_vm10, %v3159_v4, %v3161_v2 }
 0x105   : > { %3753 = vmatmul.mubr.msk.f32.vlgmr.msra.gmra.mrb[0].mxu1 %vm359_vm3, %v3617_v1  ;;  %v3163_v10 = vpop.permute.xlu1 %3162 }
 0x106   : > { %3620 = vmatmul.mubr.msk.f32.vlgmr.msra.gmra.mrb[0].mxu0 %vm359_vm3, %v3617_v1  ;;  %3756 = vmatpush3.msk.msra.mxu1 %vm363_vm2, %v3000_v3  ;;  %v3157_v11 = vpop.permute.xlu0 %3156  ;;  %v3166_v13 = vsel %vm1673_vm10, %v3161_v2, %v3163_v10 }
 0x107   : > { %3625 = vmatpush1.msk.msra.mxu0 %vm363_vm2, %v2998_v8  ;;  %3757 = vmatprep.mubr.msk.f32.mxu1 %vm3897_vm0, %v3896_v0  ;;  %v3164_v14 = vsel %vm1673_vm10, %v3157_v11, %v3159_v4 }
 0x108   : > { %3630 = vmatprep.subr.msk.mxu0 %vm363_vm2, %v3165_v9  ;;  %3074 = vmatprep.mubr.f32.mxu0 %v3896_v0 }
 0x109   : > { %3760 = vmatprep.subr.mxu1 %v3896_v0 }
 0x10d   : > { %3758 = vmatmul.mubr.msk.f32.vlgmr.msra.gmra.mrb[0].mxu1 %vm359_vm3, %v3623_v12 }
 0x10e   : > { %3626 = vmatmul.mubr.msk.f32.vlgmr.msra.gmra.mrb[0].mxu0 %vm359_vm3, %v3623_v12  ;;  %3761 = vmatpush3.msk.msra.mxu1 %vm363_vm2, %v3166_v13 }
 0x10f   : > { %3631 = vmatpush1.msk.msra.mxu0 %vm363_vm2, %v3164_v14  ;;  %3762 = vmatprep.mubr.msk.f32.mxu1 %vm3897_vm0, %v3896_v0 }
 0x110   : > { %3240 = vmatprep.mubr.f32.mxu0 %v3896_v0  ;;  %v3331_v0 = vrot.slane %v3326_v19, %v3330_v20 }
 0x115   : > { %3763 = vmatmul.mubr.msk.f32.vlgmr.msra.gmra.mrb[0].mxu1 %vm359_vm3, %v3629_v15 }
 0x116   : > { %3632 = vmatmul.mubr.msk.f32.vlgmr.msra.gmra.mrb[0].mxu0 %vm359_vm3, %v3629_v15 }
 0x1e8   : > { %v3313_v6 = vpop.f32.mrb[0].mxu1 }
 0x1e9   : > { %3325 = vst [vmem:[%s324_s17 + $0x8] sm:$0xf] %v3313_v6  ;;  %v3345_v23 = vmul.f32 %v3339_v21, %v3313_v6  ;;  %v3242_v5 = vpop.f32.mrb[0].mxu0  ;;  %v3764_v24 = vpop.f32.mrb[1].mxu1 }
 0x1ea   : > { %v3343_v25 = vmul.f32 %v3331_v0, %v3242_v5  ;;  %v3244_v26 = vpop.f32.mrb[1].mxu0 }
 0x1eb   : > { %v3322_v27 = vcombine.low %v3242_v5, %v3244_v26  ;;  %v3344_v28 = vmul.f32 %v3335_v22, %v3244_v26  ;;  %v3355_v31 = vmul.f32 %v3345_v23, %v3313_v6  ;;  %v3349_v37 = vsel %vm363_vm2, %v3345_v23, 0.0 }
 0x1ec   : > { %v3353_v29 = vmul.f32 %v3343_v25, %v3242_v5  ;;  %v3346_v30 = vsel %vm363_vm2, %v3343_v25, 0.0 }
 0x1ed   : > { %3324 = vst [vmem:[%s324_s17] sm:$0xff] %v3322_v27  ;;  %v3347_v32 = vsel %vm363_vm2, %v3344_v28, 0.0  ;;  %v3354_v33 = vmul.f32 %v3344_v28, %v3244_v26  ;;  %v3359_v40 = vsel %vm363_vm2, %v3355_v31, 0.0 }
 0x1ee   : > { %v3348_v34 = vadd.f32 %v3347_v32, %v3346_v30  ;;  %v3356_v35 = vsel %vm363_vm2, %v3353_v29, 0.0 }
 0x1ef   : > { %v3357_v36 = vsel %vm363_vm2, %v3354_v33, 0.0 }
 0x1f0   : > { %v3350_v38 = vadd.f32 %v3349_v37, %v3348_v34  ;;  %v3358_v39 = vadd.f32 %v3357_v36, %v3356_v35 }
 0x1f2   : > { %3351 = vadd.xlane.f32.xlu0 %v3350_v38  ;;  %v3360_v41 = vadd.f32 %v3359_v40, %v3358_v39 }
 0x1f4   : > { %3361 = vadd.xlane.f32.xlu1 %v3360_v41 }
 0x27f   : > { %v3352_v42 = vpop.xlane.xlu0 %3351 }
 0x280   : > { %3364 = vst.msk [vmem:[%s332_s25] sm:$0xf] %vm3363_vm11, %v3352_v42 }
 0x281   : > { %v3362_v43 = vpop.xlane.xlu1 %3361 }
 0x282   : > { %3366 = vst.msk [vmem:[%s332_s25] sm:$0xf] %vm3365_vm12, %v3362_v43 }
 0x283 PF: > { %s17_s23 = sadd.s32 1, %s3894_s23   ;;  %s4417_s21 = smov %s3890_s22 }
 0x284   : > { %p14_p5 = scmp.ge.s32.totalorder %s17_s23, 4   ;;  %s4418_s22 = smov %s4420_s24 }
 0x286   :  { %16 = sbr.rel (!%p14_p5) target bundleno = 2 (0x2), region = 106 }

</bundles_post_ra>
